<compile_context>
chip_gen: v7x
topology: tpu7x:2x2x1
jax: 0.10.0
libtpu: 0.0.40
codegen_flags: <defaults>
</compile_context>

<pallas_src>
import functools

import jax
import jax.numpy as jnp
import numpy as np
from jax.experimental import pallas as pl
from jax.experimental.pallas import tpu as pltpu


def _round_up(x, m):
    return ((x + m - 1) // m) * m


# ---------------------------------------------------------------------------
# Pallas kernel: attention MIL pooling head for a tile of TB bags per step.
# ---------------------------------------------------------------------------
def _mil_attention_head_kernel(nv_ref, cls_ref, w1_ref, b1_ref, w2_ref,
                               wfc_ref, bfc_ref, out_ref, *, num_labels):
    TB = nv_ref.shape[0]              # bags per tile
    M, H = cls_ref.shape              # M = TB * V_pad rows of CLS embeddings
    V = M // TB                       # padded verses per bag
    L = num_labels

    x = cls_ref[...]                                        # (M, H) bf16

    # Linear(H->H) + tanh: one MXU matmul for the whole bag tile.
    # bf16 operands (pre-cast in the wrapper), f32 accumulation.
    h = jnp.tanh(
        jnp.dot(x, w1_ref[...], preferred_element_type=jnp.float32)
        + b1_ref[...])                                      # (M, H) f32

    # f32 copy for the VPU/XLU path (v5e has no bf16 VPU/EUP datapath).
    x32 = x.astype(jnp.float32)

    # Layout-free reshapes: V is padded to a multiple of 8 (f32 sublane tile).
    h3 = h.reshape(TB, V, H)                                # (TB, V, H) f32
    c3 = x32.reshape(TB, V, H)                              # (TB, V, H) f32

    # Linear(H->1) score projection on VPU + XLU lane reduce.  b2 is a
    # per-score constant cancelled by the softmax, so it is dropped.
    scores = jnp.sum(h3 * w2_ref[...], axis=-1)             # (TB, V) f32

    # Masked softmax over the verse axis (mask built in-kernel from
    # num_verses; padded verses / padded bags become weight 0, never NaN).
    vidx = jax.lax.broadcasted_iota(jnp.int32, (TB, V), 1)
    valid = vidx < nv_ref[...]                               # (TB, V) bool
    masked = jnp.where(valid, scores, jnp.float32(-1e30))
    m = jnp.max(masked, axis=-1, keepdims=True)              # (TB, 1)
    e = jnp.where(valid, jnp.exp(masked - m), jnp.float32(0.0))
    s = jnp.sum(e, axis=-1, keepdims=True)                   # (TB, 1)
    w = e * pl.reciprocal(jnp.maximum(s, jnp.float32(1e-30)), approx=True)

    # Weighted bag embedding: f32 broadcast-multiply + reduce over V (VPU/XLU;
    # keep off the MXU - V is tiny).
    weighted = jnp.sum(c3 * w[..., None], axis=1)            # (TB, H) f32

    # Final fc Linear.  wfc is pre-padded to SLAB lanes so the matmul emits
    # the lane-dense output slab directly (logits in cols [0, L), zeros
    # elsewhere).  Dropout is the inference identity.
    slab = jnp.dot(weighted.astype(jnp.bfloat16), wfc_ref[...],
                   preferred_element_type=jnp.float32) + bfc_ref[...]
    out_ref[...] = slab                                      # dense 128-lane store
    out_ref[:, L:L + V] = w                                  # attn in cols [L, L+V)


def _default_bag_tile(batch, v_pad, hidden,
                      vmem_budget_bytes=20 * 1024 * 1024):
    # Per cls row: bf16 double-buffered input (2*2*H) + f32 temporaries (~8*H).
    bytes_per_row = hidden * 12 + 64
    rows = min(2048, max(8 * v_pad, vmem_budget_bytes // bytes_per_row))
    tb = max(8, (rows // v_pad) // 8 * 8)
    if batch > 8:
        # Keep >= 2 grid steps so the "parallel" axis can shard across both
        # v7x TensorCores.
        tb = min(tb, _round_up(pl.cdiv(batch, 2), 8))
    return tb


def mil_attention_head(cls_embeddings, num_verses, params, *, bag_tile=None,
                       vmem_limit_bytes=32 * 1024 * 1024):
    """cls_embeddings: (B, V, H) f32, num_verses: (B,) int.  Returns
    (logits (B, L) f32, attn_weights (B, V) f32)."""
    B, V, H = cls_embeddings.shape
    L = params["wfc"].shape[1]

    V_pad = _round_up(V, 8)                        # f32 sublane tile
    SLAB = max(128, _round_up(L + V_pad, 128))     # lane-dense output width

    if bag_tile is None:
        bag_tile = _default_bag_tile(B, V_pad, H)
    TB = bag_tile
    num_tiles = pl.cdiv(B, TB)
    B_pad = num_tiles * TB

    # --- one-time wrapper-side precision / layout prep (outside the kernel) ---
    cls = cls_embeddings.astype(jnp.bfloat16)
    cls = jnp.pad(cls, ((0, B_pad - B), (0, V_pad - V), (0, 0)))
    cls_flat = cls.reshape(B_pad * V_pad, H)                       # (M_tot, H) bf16

    nv = jnp.pad(num_verses.astype(jnp.int32), (0, B_pad - B))
    nv = nv.reshape(B_pad, 1)                                      # (B_pad, 1) i32

    w1 = params["w1"].astype(jnp.bfloat16)                         # (H, H) bf16
    b1 = params["b1"].reshape(1, H).astype(jnp.float32)
    w2 = params["w2"].reshape(1, H).astype(jnp.float32)            # row for VPU
    wfc = jnp.zeros((H, SLAB), jnp.bfloat16).at[:, :L].set(
        params["wfc"].astype(jnp.bfloat16))
    bfc = jnp.zeros((1, SLAB), jnp.float32).at[:, :L].set(
        params["bfc"].reshape(1, L).astype(jnp.float32))

    kernel = functools.partial(_mil_attention_head_kernel, num_labels=L)

    def build_and_call(single_buffer_weights):
        def wspec(shape):
            if single_buffer_weights:
                # Constant-index blocks: no need for a second pipeline buffer.
                return pl.BlockSpec(shape, lambda t: (0, 0),
                                    pipeline_mode=pl.Buffered(1))
            return pl.BlockSpec(shape, lambda t: (0, 0))

        grid_spec = pltpu.PrefetchScalarGridSpec(
            num_scalar_prefetch=0,
            grid=(num_tiles,),
            in_specs=[
                pl.BlockSpec((TB, 1), lambda t: (t, 0)),            # num_verses
                pl.BlockSpec((TB * V_pad, H), lambda t: (t, 0)),    # cls (bf16)
                wspec((H, H)),                                      # attn W1
                wspec((1, H)),                                      # attn b1
                wspec((1, H)),                                      # attn W2 row
                wspec((H, SLAB)),                                   # fc W (padded)
                wspec((1, SLAB)),                                   # fc b (padded)
            ],
            out_specs=pl.BlockSpec((TB, SLAB), lambda t: (t, 0)),   # packed slab
        )
        return pl.pallas_call(
            kernel,
            grid_spec=grid_spec,
            out_shape=jax.ShapeDtypeStruct((B_pad, SLAB), jnp.float32),
            compiler_params=pltpu.CompilerParams(
                dimension_semantics=("parallel",),
                vmem_limit_bytes=vmem_limit_bytes),
        )(nv, cls_flat, w1, b1, w2, wfc, bfc)

    try:
        out = build_and_call(True)
    except Exception:
        # Fallback if this jax/Mosaic version rejects pl.Buffered(1).
        out = build_and_call(False)

    logits = out[:B, :L]
    attn = out[:B, L:L + V]
    return logits, attn


# ---------------------------------------------------------------------------
# Plain-JAX glue: synthetic stand-in for the pretrained LLM.
# TODO(synk): self.llm (pretrained HuggingFace AutoModel) has no Pallas
#             equivalent; replaced by a deterministic embedding-lookup +
#             masked-mean + tanh-projection encoder producing CLS embeddings.
# ---------------------------------------------------------------------------
def synthetic_llm_cls(input_ids, attention_mask, enc_params):
    B, V, S = input_ids.shape
    ids = input_ids.reshape(-1, S)                           # (B*V, S)
    mask = attention_mask.reshape(-1, S).astype(jnp.float32)[..., None]
    tok = enc_params["embed"][ids]                           # (B*V, S, H)
    pooled = (tok * mask).sum(axis=1) / jnp.maximum(mask.sum(axis=1), 1.0)
    cls = jnp.tanh(pooled @ enc_params["w_enc"] + enc_params["b_enc"])
    return cls.reshape(B, V, -1)                             # (B, V, H)


# ---------------------------------------------------------------------------
# Pure-JAX reference of the MIL head (mirrors the PyTorch per-bag loop,
# including the b2 bias that the kernel drops because softmax cancels it).
# ---------------------------------------------------------------------------
def reference_head(cls_embeddings, num_verses, params):
    B, V, H = cls_embeddings.shape
    logits_list, attn_list = [], []
    for b in range(B):
        n = int(num_verses[b])
        verses = cls_embeddings[b, :n]                               # (n, H)
        h = jnp.tanh(verses @ params["w1"] + params["b1"])
        scores = h @ params["w2"] + params["b2"]                     # (n, 1)
        w = jax.nn.softmax(scores, axis=0)
        weighted = (verses * w).sum(axis=0)                          # (H,)
        logits_list.append(weighted @ params["wfc"] + params["bfc"][0])
        attn_list.append(jnp.zeros((V,), jnp.float32).at[:n].set(w[:, 0]))
    return jnp.stack(logits_list, 0), jnp.stack(attn_list, 0)


if __name__ == "__main__":
    # small shapes consistent with the forward: (B, V, S) token ids
    B, V, S = 32, 8, 16      # 32 bags -> 2 bag-tiles of 16 (TB*V = 128 rows)
    H, L = 32, 2             # hidden size, num_labels
    VOCAB = 100

    key = jax.random.PRNGKey(0)
    (k_ids, k_nv, k_emb, k_enc, k_w1, k_b1,
     k_w2, k_b2, k_wfc, k_bfc) = jax.random.split(key, 10)

    input_ids = jax.random.randint(k_ids, (B, V, S), 1, VOCAB, dtype=jnp.int32)
    attention_mask = jnp.ones((B, V, S), dtype=jnp.int32)
    num_verses = jax.random.randint(k_nv, (B,), 1, V + 1, dtype=jnp.int32)

    enc_params = {
        "embed": 0.1 * jax.random.normal(k_emb, (VOCAB, H), jnp.float32),
        "w_enc": 0.2 * jax.random.normal(k_enc, (H, H), jnp.float32),
        "b_enc": jnp.zeros((H,), jnp.float32),
    }
    head_params = {
        "w1": 0.2 * jax.random.normal(k_w1, (H, H), jnp.float32),
        "b1": 0.05 * jax.random.normal(k_b1, (1, H), jnp.float32),
        "w2": 0.2 * jax.random.normal(k_w2, (H, 1), jnp.float32),
        # nonzero b2: the reference includes it, the kernel drops it (softmax
        # cancels a constant score offset) -> outputs must still match.
        "b2": 0.3 * jax.random.normal(k_b2, (1, 1), jnp.float32),
        "wfc": 0.2 * jax.random.normal(k_wfc, (H, L), jnp.float32),
        "bfc": 0.05 * jax.random.normal(k_bfc, (1, L), jnp.float32),
    }

    # "LLM" -> CLS embeddings (glue), then Pallas MIL attention-pooling head.
    cls_embeddings = synthetic_llm_cls(input_ids, attention_mask, enc_params)
    logits, attn_weights = mil_attention_head(cls_embeddings, num_verses,
                                              head_params)
    jax.block_until_ready((logits, attn_weights))

    # Verify against the pure-JAX reference of the PyTorch semantics.  The
    # reference uses the same bf16-rounded cls / w1 / wfc (the kernel's
    # declared interchange precision); remaining tolerance covers f32-vs-bf16
    # MXU accumulation and the approx reciprocal in the softmax.
    cls_q = cls_embeddings.astype(jnp.bfloat16).astype(jnp.float32)
    ref_params = dict(head_params)
    ref_params["w1"] = head_params["w1"].astype(jnp.bfloat16).astype(jnp.float32)
    ref_params["wfc"] = head_params["wfc"].astype(jnp.bfloat16).astype(jnp.float32)
    ref_logits, ref_attn = reference_head(cls_q, num_verses, ref_params)

    np.testing.assert_allclose(np.asarray(logits), np.asarray(ref_logits),
                               rtol=1e-2, atol=5e-3)
    np.testing.assert_allclose(np.asarray(attn_weights), np.asarray(ref_attn),
                               rtol=1e-2, atol=5e-3)

    print("KERNEL_OK")
</pallas_src>

<mosaic_0001>
module attributes {stable_mosaic.version = 11 : i64} {
  func.func @_mil_attention_head_kernel(%arg0: i32, %arg1: memref<16x1xi32, #tpu.memory_space<vmem>>, %arg2: memref<128x32xbf16, #tpu.memory_space<vmem>>, %arg3: memref<32x32xbf16, #tpu.memory_space<vmem>>, %arg4: memref<1x32xf32, #tpu.memory_space<vmem>>, %arg5: memref<1x32xf32, #tpu.memory_space<vmem>>, %arg6: memref<32x128xbf16, #tpu.memory_space<vmem>>, %arg7: memref<1x128xf32, #tpu.memory_space<vmem>>, %arg8: memref<16x128xf32, #tpu.memory_space<vmem>>) attributes {dimension_semantics = [#tpu.dimension_semantics<parallel>], iteration_bounds = array<i64: 2>, scalar_prefetch = 0 : i64, scratch_operands = 0 : i64, tpu.core_type = #tpu.core_type<tc>, window_params = [{transform_indices = @transform_0, window_bounds = array<i64: 16, 1>}, {transform_indices = @transform_1, window_bounds = array<i64: 128, 32>}, {pipeline_mode = #tpu.pipeline_mode<synchronous>, transform_indices = @transform_2, window_bounds = array<i64: 32, 32>}, {pipeline_mode = #tpu.pipeline_mode<synchronous>, transform_indices = @transform_3, window_bounds = array<i64: 1, 32>}, {pipeline_mode = #tpu.pipeline_mode<synchronous>, transform_indices = @transform_4, window_bounds = array<i64: 1, 32>}, {pipeline_mode = #tpu.pipeline_mode<synchronous>, transform_indices = @transform_5, window_bounds = array<i64: 32, 128>}, {pipeline_mode = #tpu.pipeline_mode<synchronous>, transform_indices = @transform_6, window_bounds = array<i64: 1, 128>}, {transform_indices = @transform_7, window_bounds = array<i64: 16, 128>}]} {
    %c0 = arith.constant 0 : index
    %c0_0 = arith.constant 0 : index
    %0 = vector.load %arg2[%c0, %c0_0] : memref<128x32xbf16, #tpu.memory_space<vmem>>, vector<128x32xbf16>
    %c0_1 = arith.constant 0 : index
    %c0_2 = arith.constant 0 : index
    %1 = vector.load %arg3[%c0_1, %c0_2] : memref<32x32xbf16, #tpu.memory_space<vmem>>, vector<32x32xbf16>
    %cst = arith.constant dense<0.000000e+00> : vector<128x32xf32>
    %2 = tpu.matmul %0, %1, %cst {dimension_numbers = #tpu.dot_dimension_numbers<[1], [0], [0], [1], [0, 0, 1, 1], [], []>} : vector<128x32xbf16>, vector<32x32xbf16>, vector<128x32xf32> -> vector<128x32xf32>
    %c0_3 = arith.constant 0 : index
    %c0_4 = arith.constant 0 : index
    %3 = vector.load %arg4[%c0_3, %c0_4] : memref<1x32xf32, #tpu.memory_space<vmem>>, vector<1x32xf32>
    %4 = vector.broadcast %3 : vector<1x32xf32> to vector<128x32xf32>
    %5 = arith.addf %2, %4 : vector<128x32xf32>
    %6 = math.tanh %5 : vector<128x32xf32>
    %7 = arith.extf %0 : vector<128x32xbf16> to vector<128x32xf32>
    %8 = vector.shape_cast %6 : vector<128x32xf32> to vector<16x8x32xf32>
    %9 = vector.shape_cast %7 : vector<128x32xf32> to vector<16x8x32xf32>
    %c0_5 = arith.constant 0 : index
    %c0_6 = arith.constant 0 : index
    %10 = vector.load %arg5[%c0_5, %c0_6] : memref<1x32xf32, #tpu.memory_space<vmem>>, vector<1x32xf32>
    %11 = vector.shape_cast %10 : vector<1x32xf32> to vector<1x1x32xf32>
    %12 = vector.broadcast %11 : vector<1x1x32xf32> to vector<16x8x32xf32>
    %13 = arith.mulf %8, %12 : vector<16x8x32xf32>
    %cst_7 = arith.constant dense<0.000000e+00> : vector<16x8xf32>
    %14 = vector.multi_reduction <add>, %13, %cst_7 [2] : vector<16x8x32xf32> to vector<16x8xf32>
    %15 = tpu.iota {dimensions = array<i32: 1>} : vector<16x8xi32>
    %c0_8 = arith.constant 0 : index
    %c0_9 = arith.constant 0 : index
    %16 = vector.load %arg1[%c0_8, %c0_9] : memref<16x1xi32, #tpu.memory_space<vmem>>, vector<16x1xi32>
    %17 = vector.broadcast %16 : vector<16x1xi32> to vector<16x8xi32>
    %18 = arith.cmpi slt, %15, %17 : vector<16x8xi32>
    %cst_10 = arith.constant -1.000000e+30 : f32
    %19 = vector.broadcast %cst_10 : f32 to vector<16x8xf32>
    %20 = arith.select %18, %14, %19 : vector<16x8xi1>, vector<16x8xf32>
    %cst_11 = arith.constant dense<0xFF800000> : vector<16xf32>
    %21 = vector.multi_reduction <maximumf>, %20, %cst_11 [1] : vector<16x8xf32> to vector<16xf32>
    %22 = vector.shape_cast %21 : vector<16xf32> to vector<16x1xf32>
    %23 = vector.broadcast %22 : vector<16x1xf32> to vector<16x8xf32>
    %24 = arith.subf %20, %23 : vector<16x8xf32>
    %25 = math.exp %24 : vector<16x8xf32>
    %cst_12 = arith.constant 0.000000e+00 : f32
    %26 = vector.broadcast %cst_12 : f32 to vector<16x8xf32>
    %27 = arith.select %18, %25, %26 : vector<16x8xi1>, vector<16x8xf32>
    %cst_13 = arith.constant dense<0.000000e+00> : vector<16xf32>
    %28 = vector.multi_reduction <add>, %27, %cst_13 [1] : vector<16x8xf32> to vector<16xf32>
    %29 = vector.shape_cast %28 : vector<16xf32> to vector<16x1xf32>
    %cst_14 = arith.constant 1.000000e-30 : f32
    %30 = vector.broadcast %cst_14 : f32 to vector<16x1xf32>
    %31 = arith.maximumf %29, %30 : vector<16x1xf32>
    %32 = tpu.reciprocal %31 {approx = true} : vector<16x1xf32> -> vector<16x1xf32>
    %33 = vector.broadcast %32 : vector<16x1xf32> to vector<16x8xf32>
    %34 = arith.mulf %27, %33 : vector<16x8xf32>
    %35 = vector.shape_cast %34 : vector<16x8xf32> to vector<16x8x1xf32>
    %36 = vector.broadcast %35 : vector<16x8x1xf32> to vector<16x8x32xf32>
    %37 = arith.mulf %9, %36 : vector<16x8x32xf32>
    %cst_15 = arith.constant dense<0.000000e+00> : vector<16x32xf32>
    %38 = vector.multi_reduction <add>, %37, %cst_15 [1] : vector<16x8x32xf32> to vector<16x32xf32>
    %39 = arith.truncf %38 : vector<16x32xf32> to vector<16x32xbf16>
    %c0_16 = arith.constant 0 : index
    %c0_17 = arith.constant 0 : index
    %40 = vector.load %arg6[%c0_16, %c0_17] : memref<32x128xbf16, #tpu.memory_space<vmem>>, vector<32x128xbf16>
    %cst_18 = arith.constant dense<0.000000e+00> : vector<16x128xf32>
    %41 = tpu.matmul %39, %40, %cst_18 {dimension_numbers = #tpu.dot_dimension_numbers<[1], [0], [0], [1], [0, 0, 1, 1], [], []>} : vector<16x32xbf16>, vector<32x128xbf16>, vector<16x128xf32> -> vector<16x128xf32>
    %c0_19 = arith.constant 0 : index
    %c0_20 = arith.constant 0 : index
    %42 = vector.load %arg7[%c0_19, %c0_20] : memref<1x128xf32, #tpu.memory_space<vmem>>, vector<1x128xf32>
    %43 = vector.broadcast %42 : vector<1x128xf32> to vector<16x128xf32>
    %44 = arith.addf %41, %43 : vector<16x128xf32>
    %c0_21 = arith.constant 0 : index
    %c0_22 = arith.constant 0 : index
    %45 = vector.load %arg8[%c0_21, %c0_22] : memref<16x128xf32, #tpu.memory_space<vmem>>, vector<16x128xf32>
    tpu.vector_store %arg8[%c0_21, %c0_22], %44 {strides = array<i32>} : memref<16x128xf32, #tpu.memory_space<vmem>>, vector<16x128xf32>,
    %c0_23 = arith.constant 0 : index
    %c2 = arith.constant 2 : index
    %46 = vector.load %arg8[%c0_23, %c2] : memref<16x128xf32, #tpu.memory_space<vmem>>, vector<16x8xf32>
    tpu.vector_store %arg8[%c0_23, %c2], %34 {strides = array<i32>} : memref<16x128xf32, #tpu.memory_space<vmem>>, vector<16x8xf32>,
    return
  }
  func.func @transform_0(%arg0: i32) -> (i32, i32) {
    %c0_i32 = arith.constant 0 : i32
    %c0_i32_0 = arith.constant 0 : i32
    return %arg0, %c0_i32 : i32, i32
  }
  func.func @transform_1(%arg0: i32) -> (i32, i32) {
    %c0_i32 = arith.constant 0 : i32
    %c0_i32_0 = arith.constant 0 : i32
    return %arg0, %c0_i32 : i32, i32
  }
  func.func @transform_2(%arg0: i32) -> (i32, i32) {
    %c0_i32 = arith.constant 0 : i32
    %c0_i32_0 = arith.constant 0 : i32
    %c0_i32_1 = arith.constant 0 : i32
    return %c0_i32, %c0_i32_0 : i32, i32
  }
  func.func @transform_3(%arg0: i32) -> (i32, i32) {
    %c0_i32 = arith.constant 0 : i32
    %c0_i32_0 = arith.constant 0 : i32
    %c0_i32_1 = arith.constant 0 : i32
    return %c0_i32, %c0_i32_0 : i32, i32
  }
  func.func @transform_4(%arg0: i32) -> (i32, i32) {
    %c0_i32 = arith.constant 0 : i32
    %c0_i32_0 = arith.constant 0 : i32
    %c0_i32_1 = arith.constant 0 : i32
    return %c0_i32, %c0_i32_0 : i32, i32
  }
  func.func @transform_5(%arg0: i32) -> (i32, i32) {
    %c0_i32 = arith.constant 0 : i32
    %c0_i32_0 = arith.constant 0 : i32
    %c0_i32_1 = arith.constant 0 : i32
    return %c0_i32, %c0_i32_0 : i32, i32
  }
  func.func @transform_6(%arg0: i32) -> (i32, i32) {
    %c0_i32 = arith.constant 0 : i32
    %c0_i32_0 = arith.constant 0 : i32
    %c0_i32_1 = arith.constant 0 : i32
    return %c0_i32, %c0_i32_0 : i32, i32
  }
  func.func @transform_7(%arg0: i32) -> (i32, i32) {
    %c0_i32 = arith.constant 0 : i32
    %c0_i32_0 = arith.constant 0 : i32
    return %arg0, %c0_i32 : i32, i32
  }
}

module attributes {stable_mosaic.version = 11 : i64} {
  func.func @_mil_attention_head_kernel(%arg0: i32, %arg1: memref<16x1xi32, #tpu.memory_space<vmem>>, %arg2: memref<128x32xbf16, #tpu.memory_space<vmem>>, %arg3: memref<32x32xbf16, #tpu.memory_space<vmem>>, %arg4: memref<1x32xf32, #tpu.memory_space<vmem>>, %arg5: memref<1x32xf32, #tpu.memory_space<vmem>>, %arg6: memref<32x128xbf16, #tpu.memory_space<vmem>>, %arg7: memref<1x128xf32, #tpu.memory_space<vmem>>, %arg8: memref<16x128xf32, #tpu.memory_space<vmem>>) attributes {dimension_semantics = [#tpu.dimension_semantics<parallel>], iteration_bounds = array<i64: 2>, scalar_prefetch = 0 : i64, scratch_operands = 0 : i64, tpu.core_type = #tpu.core_type<tc>, window_params = [{transform_indices = @transform_0, window_bounds = array<i64: 16, 1>}, {transform_indices = @transform_1, window_bounds = array<i64: 128, 32>}, {pipeline_mode = #tpu.pipeline_mode<synchronous>, transform_indices = @transform_2, window_bounds = array<i64: 32, 32>}, {pipeline_mode = #tpu.pipeline_mode<synchronous>, transform_indices = @transform_3, window_bounds = array<i64: 1, 32>}, {pipeline_mode = #tpu.pipeline_mode<synchronous>, transform_indices = @transform_4, window_bounds = array<i64: 1, 32>}, {pipeline_mode = #tpu.pipeline_mode<synchronous>, transform_indices = @transform_5, window_bounds = array<i64: 32, 128>}, {pipeline_mode = #tpu.pipeline_mode<synchronous>, transform_indices = @transform_6, window_bounds = array<i64: 1, 128>}, {transform_indices = @transform_7, window_bounds = array<i64: 16, 128>}]} {
    %c0 = arith.constant 0 : index
    %c0_0 = arith.constant 0 : index
    %0 = vector.load %arg2[%c0, %c0_0] : memref<128x32xbf16, #tpu.memory_space<vmem>>, vector<128x32xbf16>
    %c0_1 = arith.constant 0 : index
    %c0_2 = arith.constant 0 : index
    %1 = vector.load %arg3[%c0_1, %c0_2] : memref<32x32xbf16, #tpu.memory_space<vmem>>, vector<32x32xbf16>
    %cst = arith.constant dense<0.000000e+00> : vector<128x32xf32>
    %2 = tpu.matmul %0, %1, %cst {dimension_numbers = #tpu.dot_dimension_numbers<[1], [0], [0], [1], [0, 0, 1, 1], [], []>} : vector<128x32xbf16>, vector<32x32xbf16>, vector<128x32xf32> -> vector<128x32xf32>
    %c0_3 = arith.constant 0 : index
    %c0_4 = arith.constant 0 : index
    %3 = vector.load %arg4[%c0_3, %c0_4] : memref<1x32xf32, #tpu.memory_space<vmem>>, vector<1x32xf32>
    %4 = vector.broadcast %3 : vector<1x32xf32> to vector<128x32xf32>
    %5 = arith.addf %2, %4 : vector<128x32xf32>
    %6 = math.tanh %5 : vector<128x32xf32>
    %7 = arith.extf %0 : vector<128x32xbf16> to vector<128x32xf32>
    %8 = vector.shape_cast %6 : vector<128x32xf32> to vector<16x8x32xf32>
    %9 = vector.shape_cast %7 : vector<128x32xf32> to vector<16x8x32xf32>
    %c0_5 = arith.constant 0 : index
    %c0_6 = arith.constant 0 : index
    %10 = vector.load %arg5[%c0_5, %c0_6] : memref<1x32xf32, #tpu.memory_space<vmem>>, vector<1x32xf32>
    %11 = vector.shape_cast %10 : vector<1x32xf32> to vector<1x1x32xf32>
    %12 = vector.broadcast %11 : vector<1x1x32xf32> to vector<16x8x32xf32>
    %13 = arith.mulf %8, %12 : vector<16x8x32xf32>
    %cst_7 = arith.constant dense<0.000000e+00> : vector<16x8xf32>
    %14 = vector.multi_reduction <add>, %13, %cst_7 [2] : vector<16x8x32xf32> to vector<16x8xf32>
    %15 = tpu.iota {dimensions = array<i32: 1>} : vector<16x8xi32>
    %c0_8 = arith.constant 0 : index
    %c0_9 = arith.constant 0 : index
    %16 = vector.load %arg1[%c0_8, %c0_9] : memref<16x1xi32, #tpu.memory_space<vmem>>, vector<16x1xi32>
    %17 = vector.broadcast %16 : vector<16x1xi32> to vector<16x8xi32>
    %18 = arith.cmpi slt, %15, %17 : vector<16x8xi32>
    %cst_10 = arith.constant -1.000000e+30 : f32
    %19 = vector.broadcast %cst_10 : f32 to vector<16x8xf32>
    %20 = arith.select %18, %14, %19 : vector<16x8xi1>, vector<16x8xf32>
    %cst_11 = arith.constant dense<0xFF800000> : vector<16xf32>
    %21 = vector.multi_reduction <maximumf>, %20, %cst_11 [1] : vector<16x8xf32> to vector<16xf32>
    %22 = vector.shape_cast %21 : vector<16xf32> to vector<16x1xf32>
    %23 = vector.broadcast %22 : vector<16x1xf32> to vector<16x8xf32>
    %24 = arith.subf %20, %23 : vector<16x8xf32>
    %25 = math.exp %24 : vector<16x8xf32>
    %cst_12 = arith.constant 0.000000e+00 : f32
    %26 = vector.broadcast %cst_12 : f32 to vector<16x8xf32>
    %27 = arith.select %18, %25, %26 : vector<16x8xi1>, vector<16x8xf32>
    %cst_13 = arith.constant dense<0.000000e+00> : vector<16xf32>
    %28 = vector.multi_reduction <add>, %27, %cst_13 [1] : vector<16x8xf32> to vector<16xf32>
    %29 = vector.shape_cast %28 : vector<16xf32> to vector<16x1xf32>
    %cst_14 = arith.constant 1.000000e-30 : f32
    %30 = vector.broadcast %cst_14 : f32 to vector<16x1xf32>
    %31 = arith.maximumf %29, %30 : vector<16x1xf32>
    %32 = tpu.reciprocal %31 {approx = true} : vector<16x1xf32> -> vector<16x1xf32>
    %33 = vector.broadcast %32 : vector<16x1xf32> to vector<16x8xf32>
    %34 = arith.mulf %27, %33 : vector<16x8xf32>
    %35 = vector.shape_cast %34 : vector<16x8xf32> to vector<16x8x1xf32>
    %36 = vector.broadcast %35 : vector<16x8x1xf32> to vector<16x8x32xf32>
    %37 = arith.mulf %9, %36 : vector<16x8x32xf32>
    %cst_15 = arith.constant dense<0.000000e+00> : vector<16x32xf32>
    %38 = vector.multi_reduction <add>, %37, %cst_15 [1] : vector<16x8x32xf32> to vector<16x32xf32>
    %39 = arith.truncf %38 : vector<16x32xf32> to vector<16x32xbf16>
    %c0_16 = arith.constant 0 : index
    %c0_17 = arith.constant 0 : index
    %40 = vector.load %arg6[%c0_16, %c0_17] : memref<32x128xbf16, #tpu.memory_space<vmem>>, vector<32x128xbf16>
    %cst_18 = arith.constant dense<0.000000e+00> : vector<16x128xf32>
    %41 = tpu.matmul %39, %40, %cst_18 {dimension_numbers = #tpu.dot_dimension_numbers<[1], [0], [0], [1], [0, 0, 1, 1], [], []>} : vector<16x32xbf16>, vector<32x128xbf16>, vector<16x128xf32> -> vector<16x128xf32>
    %c0_19 = arith.constant 0 : index
    %c0_20 = arith.constant 0 : index
    %42 = vector.load %arg7[%c0_19, %c0_20] : memref<1x128xf32, #tpu.memory_space<vmem>>, vector<1x128xf32>
    %43 = vector.broadcast %42 : vector<1x128xf32> to vector<16x128xf32>
    %44 = arith.addf %41, %43 : vector<16x128xf32>
    %c0_21 = arith.constant 0 : index
    %c0_22 = arith.constant 0 : index
    %45 = vector.load %arg8[%c0_21, %c0_22] : memref<16x128xf32, #tpu.memory_space<vmem>>, vector<16x128xf32>
    tpu.vector_store %arg8[%c0_21, %c0_22], %44 {strides = array<i32>} : memref<16x128xf32, #tpu.memory_space<vmem>>, vector<16x128xf32>,
    %c0_23 = arith.constant 0 : index
    %c2 = arith.constant 2 : index
    %46 = vector.load %arg8[%c0_23, %c2] : memref<16x128xf32, #tpu.memory_space<vmem>>, vector<16x8xf32>
    tpu.vector_store %arg8[%c0_23, %c2], %34 {strides = array<i32>} : memref<16x128xf32, #tpu.memory_space<vmem>>, vector<16x8xf32>,
    return
  }
  func.func @transform_0(%arg0: i32) -> (i32, i32) {
    %c0_i32 = arith.constant 0 : i32
    %c0_i32_0 = arith.constant 0 : i32
    return %arg0, %c0_i32 : i32, i32
  }
  func.func @transform_1(%arg0: i32) -> (i32, i32) {
    %c0_i32 = arith.constant 0 : i32
    %c0_i32_0 = arith.constant 0 : i32
    return %arg0, %c0_i32 : i32, i32
  }
  func.func @transform_2(%arg0: i32) -> (i32, i32) {
    %c0_i32 = arith.constant 0 : i32
    %c0_i32_0 = arith.constant 0 : i32
    %c0_i32_1 = arith.constant 0 : i32
    return %c0_i32, %c0_i32_0 : i32, i32
  }
  func.func @transform_3(%arg0: i32) -> (i32, i32) {
    %c0_i32 = arith.constant 0 : i32
    %c0_i32_0 = arith.constant 0 : i32
    %c0_i32_1 = arith.constant 0 : i32
    return %c0_i32, %c0_i32_0 : i32, i32
  }
  func.func @transform_4(%arg0: i32) -> (i32, i32) {
    %c0_i32 = arith.constant 0 : i32
    %c0_i32_0 = arith.constant 0 : i32
    %c0_i32_1 = arith.constant 0 : i32
    return %c0_i32, %c0_i32_0 : i32, i32
  }
  func.func @transform_5(%arg0: i32) -> (i32, i32) {
    %c0_i32 = arith.constant 0 : i32
    %c0_i32_0 = arith.constant 0 : i32
    %c0_i32_1 = arith.constant 0 : i32
    return %c0_i32, %c0_i32_0 : i32, i32
  }
  func.func @transform_6(%arg0: i32) -> (i32, i32) {
    %c0_i32 = arith.constant 0 : i32
    %c0_i32_0 = arith.constant 0 : i32
    %c0_i32_1 = arith.constant 0 : i32
    return %c0_i32, %c0_i32_0 : i32, i32
  }
  func.func @transform_7(%arg0: i32) -> (i32, i32) {
    %c0_i32 = arith.constant 0 : i32
    %c0_i32_0 = arith.constant 0 : i32
    return %arg0, %c0_i32 : i32, i32
  }
}

</mosaic_0001>

<bundles_post_ra>
// kernel: tpu_custom_call.1
= control target key start
LH: loop header
LB: loop body
LE: loop exit
PB: predicated region body
PF: predicated region fallthrough
CT: control target
= control target key end

     0   :  { %12 = vsyncpa [#allocation3], 0  ;;  %s1837_s0 = inlined_call_operand.vmem [shape: s32[32,1], index: 0, kind: input, shape index: {}]   ;;  %s1838_s1 = inlined_call_operand.vmem [shape: bf16[256,32], index: 1, kind: input, shape index: {}]   ;;  %s1839_s2 = inlined_call_operand.vmem [shape: bf16[32,32], index: 2, kind: input, shape index: {}]   ;;  %s1840_s3 = inlined_call_operand.vmem [shape: f32[1,32], index: 3, kind: input, shape index: {}]   ;;  %s1841_s4 = inlined_call_operand.vmem [shape: f32[1,32], index: 4, kind: input, shape index: {}]   ;;  %s1842_s5 = inlined_call_operand.vmem [shape: bf16[32,128], index: 5, kind: input, shape index: {}]   ;;  %s1843_s6 = inlined_call_operand.vmem [shape: f32[1,128], index: 6, kind: input, shape index: {}]   ;;  %s1844_s7 = inlined_call_operand.hbm [shape: f32[32,128], index: 7, kind: output, shape index: {}]  }
   0x1   :  { %14 = vsyncpa [#allocation3 + $0x1], 0  ;;  %s1524_s24 = smov 0   ;;  %s1526_s25 = smov 0  }
   0x2   :  { %s1528_s26 = smov 0   ;;  %s1530_s27 = smov 0  }
   0x3 LB: > { %s1545_s28 = sadd.s32 4294967295, %s1475_s27   ;;  %s1222_s29 = sadd.s32 4294967294, %s1475_s27   ;;  %s1475_s27 = sphi %s1530_s27, %s1850_s27   ;;  %s1471_s26 = sphi %s1528_s26, %s1849_s26   ;;  %s1467_s25 = sphi %s1526_s25, %s1848_s25   ;;  %s1463_s24 = sphi %s1524_s24, %s1847_s24  }
   0x4   : > { %s1549_s30 = sadd.s32 1, %s1475_s27   ;;  %s184_s8 = sadd.s32 1, %s1471_s26 }
   0x5   : > { %s181_s9 = ssub.s32 %s1475_s27, %s1549_s30  ;;  %p194_p0 = scmp.ne.s32.totalorder %s1471_s26, %s1467_s25 }
   0x6   : > { %p182_p1 = scmp.eq.s32.totalorder %s181_s9, 0  ;;  %p195_p2 = scmp.eq.s32.totalorder %s1545_s28, 1 }
   0x7   : > { %p200_p3 = scmp.ne.s32.totalorder %s1467_s25, %s1463_s24  ;;  %p201_p4 = scmp.eq.s32.totalorder %s1222_s29, 1 }
   0x8   : > { %s1560_s10 = scalar_select %p182_p1, %s1471_s26, %s184_s8  }
   0x9   : > { %p1562_p5 = por %p195_p2, %p194_p0  ;;  %p1566_p6 = por %p201_p4, %p200_p3 }
   0xa   : > { %p1225_p7 = scmp.ge.s32.totalorder %s1475_s27, 1  ;;  %p252_p8 = scmp.lt.s32.totalorder %s1475_s27, 3 }
   0xc   : > { %p253_p9 = pnand %p1225_p7, %p252_p8 }
   0xd   : > { %v1353_v0 = vld [vmem:[%s1839_s2] sm:$0xff] (!%p253_p9)   ;;  %s1229_s15 = sshll.u32 (!%p253_p9), %s1545_s28, 4  ;;  %v1354_v1 = vld [vmem:[%s1839_s2 + $0x8] sm:$0xff] (!%p253_p9)   ;;  %vm382_vm0 = vcmask (!%p253_p9), 261120   ;;  %v1477_v10 = vmov (!%p253_p9), 0   ;;  %s1227_s9 = sshll.u32 (!%p253_p9), %s1545_s28, 1 }
   0xe   : > { %256 = sbr.rel (%p253_p9) target bundleno = 1158 (0x486), region = 48  ;;  %p296_p10 = scmp.lt.s32.totalorder (!%p253_p9), %s1229_s15, 31  ;;  %1274 = vmatprep.subr.bf16.mxu0 (!%p253_p9), %v1353_v0  ;;  %1302 = vmatprep.subr.bf16.mxu1 (!%p253_p9), %v1353_v0  ;;  %v1617_v11 = vld [vmem:[%s1840_s3] ss:$0 sm:$0xff] (!%p253_p9)  ;;  %vm699_vm1 = vcmask (!%p253_p9), 1041409   ;;  %vm701_vm2 = vcmask (!%p253_p9), 1042434  }
   0xf   : > { %1275 = vmatpush3.bf16.msra.mxu0 (!%p253_p9), %v1353_v0  ;;  %1304 = vmatpush3.bf16.msra.mxu1 (!%p253_p9), %v1353_v0  ;;  %v1631_v33 = vld [vmem:[%s1841_s4] ss:$0 sm:$0xff] (!%p253_p9)  ;;  %p290_p11 = scmp.lt.s32.totalorder (!%p253_p9), %s1227_s9, 3  ;;  %vm703_vm3 = vcmask (!%p253_p9), 1043459   ;;  %vm705_vm4 = vcmask (!%p253_p9), 1044484   ;;  %vm707_vm5 = vcmask (!%p253_p9), 1045509  }
  0x10   : > { %1276 = vmatprep.subr.bf16.mxu0 (!%p253_p9), %v1354_v1  ;;  %1303 = vmatprep.subr.bf16.mxu1 (!%p253_p9), %v1354_v1  ;;  %vm709_vm6 = vcmask (!%p253_p9), 1046534   ;;  %vm711_vm7 = vcmask (!%p253_p9), 1047559   ;;  %vm724_vm9 = vcmask (!%p253_p9), 64512   ;;  %s1478_s17 = smov (!%p253_p9), 2   ;;  %vm1480_vm11 = vmmov (!%p253_p9), 0   ;;  %s286_s22 = sand.u32 (!%p253_p9), 1, %s1467_s25  }
  0x11   : > { %1352 = vset.pattern.permute.xlu1 (!%p253_p9), %v1477_v10  ;;  %1351 = vset.pattern.permute.xlu0 (!%p253_p9), %v1477_v10  ;;  %s1226_s23 = sshll.u32 (!%p253_p9), %s286_s22, 4  ;;  %vm1131_vm12 = vcmask (!%p253_p9), 80912   ;;  %s1481_s19 = smov (!%p253_p9), [#allocation2]  }
  0x12   : > { %s1417_s20 = sshll.u32 (!%p253_p9), %s1481_s19, 4  ;;  %s1418_s20 = int_to_ptr.vmem [resolvable:$false] %s1417_s20 }
  0x13   : > { %1277 = vmatpush3.bf16.msra.mxu0 (!%p253_p9), %v1354_v1  ;;  %1305 = vmatpush3.bf16.msra.mxu1 (!%p253_p9), %v1354_v1 }
  0x15   : > { %s1852_s15 = smov (!%p296_p10, %s1229_s15), 31  ;;  %s1854_s9 = smov (!%p290_p11, %s1227_s9), 3 }
  0x16   : > { %s1230_s18 = sshll.u32 %s1852_s15, 2  ;;  %s1228_s13 = sshll.u32 %s1854_s9, 3 }
  0x17   : > { %s299_s21 = scalar_lea.vmem %s1838_s1, %s1230_s18  ;;  %s293_s16 = scalar_lea.vmem %s1837_s0, %s1228_s13 }
  0x18   : > { %v1582_v2 = vld [vmem:[%s299_s21] sm:$0xff]   ;;  %v1584_v3 = vld [vmem:[%s299_s21 + $0x30] sm:$0xff]   ;;  %v1586_v4 = vld [vmem:[%s299_s21 + $0x8] sm:$0xff]   ;;  %s1260_s9 = sshll.u32 %s1545_s28, 8  ;;  %s288_s13 = scalar_lea.vmem [#allocation2], %s1226_s23 }
  0x19   : > { %v1588_v5 = vld [vmem:[%s299_s21 + $0x38] sm:$0xff]   ;;  %v1590_v6 = vld [vmem:[%s299_s21 + $0x10] sm:$0xff]   ;;  %1278 = vmatprep.mubr.msk.bf16.mxu0 %vm382_vm0, %v1582_v2  ;;  %1290 = vmatprep.mubr.msk.bf16.mxu1 %vm382_vm0, %v1584_v3  ;;  %v1604_v8 = vld [vmem:[%s299_s21 + $0x20] sm:$0xff]   ;;  %s1148_s14 = sshll.u32 %s288_s13, 4  ;;  %s1796_s28 = scalar_lea.sflag [#allocation3], %s286_s22  ;;  %s1794_s14 = int_to_ptr.vmem [resolvable:$true] %s1148_s14 }
  0x1a   : > { %1279 = vmatmul.mubr.msk.bf16.vlgmr.msra.gmra.mrb[0].mxu0 %vm382_vm0, %v1586_v4  ;;  %1291 = vmatmul.mubr.msk.bf16.vlgmr.msra.gmra.mrb[0].mxu1 %vm382_vm0, %v1588_v5  ;;  %v1602_v7 = vld [vmem:[%s299_s21 + $0x18] sm:$0xff]   ;;  %v1610_v9 = vld [vmem:[%s299_s21 + $0x28] sm:$0xff]   ;;  %s1413_s18 = scalar_lea.vmem %s1794_s14, 256  ;;  %s1419_s21 = scalar_lea.vmem %s1418_s20, 512 }
  0x1b   : > { %1282 = vmatprep.mubr.msk.bf16.mxu0 %vm382_vm0, %v1590_v6  ;;  %p1414_p12 = scmp.ne.s32.totalorder %s1794_s14, %s1413_s18  ;;  %p1420_p1 = scmp.lt.s32.totalorder %s1794_s14, %s1418_s20 }
  0x1c   : > { %p1421_p2 = scmp.lt.s32.totalorder %s1419_s21, %s1413_s18 }
  0x1d   : > { %p1415_p13 = pnand %p1414_p12, %p1562_p5 }
  0x1e   : > { %p1422_p3 = por %p1421_p2, %p1420_p1 }
  0x1f   : > { %p1416_p0 = pneg %p1415_p13 }
  0x21   : > { %p1423_p4 = pnand %p1422_p3, %p1416_p0 }
  0x22   : > { %1283 = vmatmul.mubr.msk.bf16.gmra.mrb[4].mxu0 %vm382_vm0, %v1602_v7 }
  0x23   : > { %1286 = vmatprep.mubr.msk.bf16.mxu0 %vm382_vm0, %v1604_v8 }
  0x2a   : > { %1287 = vmatmul.mubr.msk.bf16.gmra.mrb[8].mxu0 %vm382_vm0, %v1610_v9 }
  0xed   : > { %v1280_v12 = vpop.f32.mrb[0].mxu0  ;;  %v1292_v13 = vpop.f32.mrb[0].mxu1 }
  0xee   : > { %v450_v14 = vadd.f32 %v1280_v12, %v1617_v11  ;;  %v498_v15 = vadd.f32 %v1292_v13, %v1617_v11  ;;  %v441_v16 = vpop.f32.mrb[1].mxu0  ;;  %v489_v17 = vpop.f32.mrb[1].mxu1 }
  0xef   : > { %v442_v18 = vadd.f32 %v1617_v11, %v441_v16  ;;  %v1281_v19 = vpop.f32.mrb[2].mxu0  ;;  %v1293_v20 = vpop.f32.mrb[2].mxu1  ;;  %v490_v24 = vadd.f32 %v1617_v11, %v489_v17 }
  0xf0   : > { %1373 = vtanh.f32 %v450_v14  ;;  %v453_v21 = vadd.f32 %v1281_v19, %v1617_v11  ;;  %v444_v22 = vpop.f32.mrb[3].mxu0  ;;  %v492_v23 = vpop.f32.mrb[3].mxu1  ;;  %v501_v25 = vadd.f32 %v1293_v20, %v1617_v11 }
  0xf1   : > { %1375 = vtanh.f32 %v498_v15  ;;  %v493_v26 = vadd.f32 %v1617_v11, %v492_v23  ;;  %v445_v27 = vadd.f32 %v1617_v11, %v444_v22 }
  0xf2   : > { %1377 = vtanh.f32 %v442_v18 }
  0xf3   : > { %1379 = vtanh.f32 %v453_v21 }
  0xf4   : > { %1381 = vtanh.f32 %v490_v24 }
  0xf5   : > { %v1284_v28 = vpop.f32.mrb[4].mxu0  ;;  %1383 = vtanh.f32 %v501_v25 }
  0xf6   : > { %v466_v29 = vadd.f32 %v1284_v28, %v1617_v11  ;;  %v457_v30 = vpop.f32.mrb[5].mxu0  ;;  %1385 = vtanh.f32 %v493_v26 }
  0xf7   : > { %v1285_v31 = vpop.f32.mrb[6].mxu0  ;;  %1387 = vtanh.f32 %v445_v27  ;;  %v458_v36 = vadd.f32 %v1617_v11, %v457_v30 }
  0xf8   : > { %v460_v32 = vpop.f32.mrb[7].mxu0  ;;  %1389 = vtanh.f32 %v466_v29  ;;  %v469_v51 = vadd.f32 %v1285_v31, %v1617_v11 }
  0xf9   : > { %1391 = vtanh.f32 %v458_v36  ;;  %v461_v63 = vadd.f32 %v1617_v11, %v460_v32 }
  0xfa   : > { %v1374_v34 = vpop.eup %1373 }
  0xfb   : > { %v1376_v35 = vpop.eup %1375  ;;  %v545_v37 = vmul.f32 %v1374_v34, %v1631_v33 }
  0xfc   : > { %v1378_v38 = vpop.eup %1377  ;;  %v557_v39 = vmul.f32 %v1376_v35, %v1631_v33 }
  0xfd   : > { %v1288_v40 = vpop.f32.mrb[8].mxu0  ;;  %v565_v41 = vsel %vm382_vm0, %v545_v37, 0.0  ;;  %v543_v42 = vmul.f32 %v1378_v38, %v1631_v33  ;;  %v1380_v43 = vpop.eup %1379  ;;  %v610_v38 = vld [vmem:[%s293_s16 + $0x8] sm:$0xff] }
  0xfe   : > { %v482_v44 = vadd.f32 %v1288_v40, %v1617_v11  ;;  %v601_v45 = vsel %vm382_vm0, %v557_v39, 0.0  ;;  %566 = vadd.xlane.f32.xlu0 %v565_v41  ;;  %v473_v46 = vpop.f32.mrb[9].mxu0  ;;  %v1382_v47 = vpop.eup %1381  ;;  %v546_v58 = vmul.f32 %v1380_v43, %v1631_v33  ;;  %v609_v39 = vld [vmem:[%s293_s16] sm:$0xff] }
  0xff   : > { %602 = vadd.xlane.f32.xlu1 %v601_v45  ;;  %v474_v48 = vadd.f32 %v1617_v11, %v473_v46  ;;  %v1289_v49 = vpop.f32.mrb[10].mxu0  ;;  %v1384_v50 = vpop.eup %1383  ;;  %v555_v52 = vmul.f32 %v1382_v47, %v1631_v33  ;;  %v559_v56 = vsel %vm382_vm0, %v543_v42, 0.0 }
 0x100   : > { %1393 = vtanh.f32 %v482_v44  ;;  %v485_v53 = vadd.f32 %v1289_v49, %v1617_v11  ;;  %v476_v54 = vpop.f32.mrb[11].mxu0  ;;  %v1386_v55 = vpop.eup %1385  ;;  %v558_v57 = vmul.f32 %v1384_v50, %v1631_v33  ;;  %v568_v10 = vsel %vm382_vm0, %v546_v58, 0.0 }
 0x101   : > { %1395 = vtanh.f32 %v474_v48  ;;  %v1388_v59 = vpop.eup %1387  ;;  %v595_v60 = vsel %vm382_vm0, %v555_v52, 0.0  ;;  %v477_v61 = vadd.f32 %v1617_v11, %v476_v54  ;;  %v556_v1 = vmul.f32 %v1386_v55, %v1631_v33 }
 0x102   : > { %560 = vadd.xlane.f32.xlu0 %v559_v56  ;;  %1397 = vtanh.f32 %v485_v53  ;;  %v1390_v62 = vpop.eup %1389  ;;  %v604_v0 = vsel %vm382_vm0, %v558_v57, 0.0  ;;  %v544_v12 = vmul.f32 %v1388_v59, %v1631_v33  ;;  %v607_v44 = vlaneseq }
 0x103   : > { %596 = vadd.xlane.f32.xlu1 %v595_v60  ;;  %1399 = vtanh.f32 %v469_v51  ;;  %v549_v13 = vmul.f32 %v1390_v62, %v1631_v33  ;;  %v598_v14 = vsel %vm382_vm0, %v556_v1, 0.0  ;;  %v1392_v15 = vpop.eup %1391 }
 0x104   : > { %1401 = vtanh.f32 %v477_v61  ;;  %v562_v16 = vsel %vm382_vm0, %v544_v12, 0.0  ;;  %v547_v23 = vmul.f32 %v1392_v15, %v1631_v33  ;;  %v1676_v47 = vand.u32 127, %v607_v44 }
 0x105   : > { %1403 = vtanh.f32 %v461_v63  ;;  %v577_v19 = vsel %vm382_vm0, %v549_v13, 0.0  ;;  %v1678_v48 = vshrl.u32 %v607_v44, 7 }
 0x106   : > { %569 = vadd.xlane.f32.xlu0 %v568_v10  ;;  %v571_v28 = vsel %vm382_vm0, %v547_v23, 0.0 }
 0x107   : > { %605 = vadd.xlane.f32.xlu1 %v604_v0  ;;  %v637_v51 = vsub.s32 %v1676_v47, %v1678_v48 }
 0x10a   : > { %v1394_v11 = vpop.eup %1393  ;;  %563 = vadd.xlane.f32.xlu0 %v562_v16 }
 0x10b   : > { %v1396_v17 = vpop.eup %1395  ;;  %599 = vadd.xlane.f32.xlu1 %v598_v14  ;;  %v553_v18 = vmul.f32 %v1394_v11, %v1631_v33 }
 0x10c   : > { %v551_v20 = vmul.f32 %v1396_v17, %v1631_v33  ;;  %v1398_v21 = vpop.eup %1397 }
 0x10d   : > { %v589_v22 = vsel %vm382_vm0, %v553_v18, 0.0  ;;  %v1400_v24 = vpop.eup %1399  ;;  %v554_v26 = vmul.f32 %v1398_v21, %v1631_v33 }
 0x10e   : > { %578 = vadd.xlane.f32.xlu0 %v577_v19  ;;  %v583_v25 = vsel %vm382_vm0, %v551_v20, 0.0  ;;  %v1402_v27 = vpop.eup %1401  ;;  %v550_v29 = vmul.f32 %v1400_v24, %v1631_v33 }
 0x10f   : > { %590 = vadd.xlane.f32.xlu1 %v589_v22  ;;  %v1404_v30 = vpop.eup %1403  ;;  %v592_v31 = vsel %vm382_vm0, %v554_v26, 0.0  ;;  %v552_v32 = vmul.f32 %v1402_v27, %v1631_v33 }
 0x110   : > { %v580_v34 = vsel %vm382_vm0, %v550_v29, 0.0  ;;  %v548_v35 = vmul.f32 %v1404_v30, %v1631_v33 }
 0x111   : > { %v586_v36 = vsel %vm382_vm0, %v552_v32, 0.0 }
 0x112   : > { %572 = vadd.xlane.f32.xlu0 %v571_v28  ;;  %v574_v37 = vsel %vm382_vm0, %v548_v35, 0.0 }
 0x113   : > { %584 = vadd.xlane.f32.xlu1 %v583_v25 }
 0x116   : > { %581 = vadd.xlane.f32.xlu0 %v580_v34 }
 0x117   : > { %593 = vadd.xlane.f32.xlu1 %v592_v31 }
 0x11a   : > { %575 = vadd.xlane.f32.xlu0 %v574_v37 }
 0x11b   : > { %587 = vadd.xlane.f32.xlu1 %v586_v36 }
 0x12c   : > { %615 = vperm.xlu1 %1352, %v610_v38  }
 0x130   : > { %612 = vperm.xlu0 %1351, %v609_v39  }
 0x18b   : > { %v567_v33 = vpop.xlane.xlu0 %566 }
 0x18c   : > { %v603_v40 = vpop.xlane.xlu1 %602  ;;  %v646_v58 = vrot.slane %v567_v33, %v637_v51 }
 0x18d   : > { %v694_v26 = vrot.slane %v603_v40, %v637_v51 }
 0x18f   : > { %v561_v41 = vpop.xlane.xlu0 %560 }
 0x190   : > { %v597_v42 = vpop.xlane.xlu1 %596  ;;  %v638_v55 = vrot.slane %v561_v41, %v637_v51 }
 0x191   : > { %v686_v20 = vrot.slane %v597_v42, %v637_v51 }
 0x193   : > { %v570_v43 = vpop.xlane.xlu0 %569 }
 0x194   : > { %v606_v45 = vpop.xlane.xlu1 %605  ;;  %v650_v63 = vrot.slane %v570_v43, %v637_v51 }
 0x195   : > { %v698_v29 = vrot.slane %v606_v45, %v637_v51 }
 0x197   : > { %v564_v46 = vpop.xlane.xlu0 %563 }
 0x198   : > { %v600_v49 = vpop.xlane.xlu1 %599  ;;  %v642_v53 = vrot.slane %v564_v46, %v637_v51 }
 0x199   : > { %v690_v23 = vrot.slane %v600_v49, %v637_v51 }
 0x19a   : > { %v700_v57 = vsel %vm699_vm1, %v642_v53, %v638_v55 }
 0x19b   : > { %v579_v50 = vpop.xlane.xlu0 %578  ;;  %v702_v61 = vsel %vm701_vm2, %v646_v58, %v700_v57  ;;  %v760_v57 = vsub.s32 1, %v1678_v48  ;;  %v753_v58 = vsub.s32 0, %v1678_v48 }
 0x19c   : > { %v591_v52 = vpop.xlane.xlu1 %590  ;;  %v704_v12 = vsel %vm703_vm3, %v650_v63, %v702_v61  ;;  %v662_v18 = vrot.slane %v579_v50, %v637_v51 }
 0x19d   : > { %v678_v10 = vrot.slane %v591_v52, %v637_v51 }
 0x19f   : > { %v573_v54 = vpop.xlane.xlu0 %572 }
 0x1a0   : > { %v585_v56 = vpop.xlane.xlu1 %584  ;;  %v654_v62 = vrot.slane %v573_v54, %v637_v51 }
 0x1a1   : > { %v670_v0 = vrot.slane %v585_v56, %v637_v51 }
 0x1a2   : > { %v706_v15 = vsel %vm705_vm4, %v654_v62, %v704_v12 }
 0x1a3   : > { %v582_v59 = vpop.xlane.xlu0 %581 }
 0x1a4   : > { %v594_v60 = vpop.xlane.xlu1 %593  ;;  %v666_v27 = vrot.slane %v582_v59, %v637_v51 }
 0x1a5   : > { %v682_v16 = vrot.slane %v594_v60, %v637_v51 }
 0x1a7   : > { %v576_v1 = vpop.xlane.xlu0 %575 }
 0x1a8   : > { %v588_v13 = vpop.xlane.xlu1 %587  ;;  %v658_v14 = vrot.slane %v576_v1, %v637_v51  ;;  %v774_v1 = vsub.s32 3, %v1678_v48 }
 0x1a9   : > { %v674_v11 = vrot.slane %v588_v13, %v637_v51  ;;  %v781_v13 = vsub.s32 4, %v1678_v48 }
 0x1aa   : > { %v708_v17 = vsel %vm707_vm5, %v658_v14, %v706_v15 }
 0x1ab   : > { %v713_v19 = vsel %vm699_vm1, %v674_v11, %v670_v0  ;;  %v710_v25 = vsel %vm709_vm6, %v662_v18, %v708_v17  ;;  %v795_v18 = vsub.s32 6, %v1678_v48 }
 0x1ac   : > { %v714_v21 = vsel %vm701_vm2, %v678_v10, %v713_v19  ;;  %v616_v22 = vpop.permute.xlu1 %615  ;;  %v712_v34 = vsel %vm711_vm7, %v666_v27, %v710_v25 }
 0x1ad   : > { %v715_v24 = vsel %vm703_vm3, %v682_v16, %v714_v21  ;;  %vm618_vm8 = vcmp.lt.s32.totalorder %v1676_v47, %v616_v22  ;;  %v788_v16 = vsub.s32 5, %v1678_v48  ;;  %v802_v21 = vsub.s32 7, %v1678_v48 }
 0x1ae   : > { %v716_v28 = vsel %vm705_vm4, %v686_v20, %v715_v24 }
 0x1af   : > { %v613_v30 = vpop.permute.xlu0 %612  ;;  %v717_v31 = vsel %vm707_vm5, %v690_v23, %v716_v28  ;;  %v1363_v28 = vld [vmem:[%s1842_s5] sm:$0xff]  }
 0x1b0   : > { %vm617_vm10 = vcmp.lt.s32.totalorder %v1676_v47, %v613_v30  ;;  %v718_v32 = vsel %vm709_vm6, %v694_v26, %v717_v31  ;;  %v767_v47 = vsub.s32 2, %v1678_v48  ;;  %v1479_v48 = vmov 0.0  }
 0x1b1   : > { %v719_v35 = vsel %vm711_vm7, %v698_v29, %v718_v32  ;;  %v722_v36 = vsel %vm617_vm10, %v712_v34, -1e+30  ;;  %1294 = vmatprep.subr.bf16.mxu1 %v1479_v48  ;;  %1298 = vmatprep.mubr.msk.bf16.mxu1 %vm1480_vm11, %v1479_v48  ;;  %v1364_v29 = vld [vmem:[%s1842_s5 + $0x8] sm:$0xff]   ;;  %v520_v30 = vunpack.c.l.bf16 %v1582_v2  ;;  %v521_v31 = vunpack.c.h.bf16 %v1582_v2 }
 0x1b2   : > { %v723_v37 = vsel %vm618_vm8, %v719_v35, -1e+30  ;;  %v725_v38 = vsel %vm724_vm9, %v722_v36, -inf  ;;  %1295 = vmatpush3.bf16.msra.mxu1 %v1363_v28 }
 0x1b3   : > { %v728_v39 = vsel %vm724_vm9, %v723_v37, -inf  ;;  %726 = vmax.xlane.f32.xlu1 %v725_v38  ;;  %1296 = vmatprep.subr.bf16.mxu1 %v1479_v48  ;;  %v531_v38 = vunpack.c.h.bf16 %v1610_v9 }
 0x1b4   : > { %729 = vmax.xlane.f32.xlu0 %v728_v39 }
 0x1b6   : > { %1297 = vmatpush3.bf16.msra.mxu1 %v1364_v29 }
 0x240   : > { %v727_v33 = vpop.xlane.xlu1 %726 }
 0x241   : > { %v731_v40 = vsub.f32 %v722_v36, %v727_v33  ;;  %v730_v41 = vpop.xlane.xlu0 %729 }
 0x242   : > { %v732_v42 = vsub.f32 %v723_v37, %v730_v41  ;;  %v522_v37 = vunpack.c.l.bf16 %v1586_v4 }
 0x243   : > { %v733_v43 = vmul.f32 1.442695, %v731_v40 }
 0x244   : > { %v735_v44 = vmul.f32 1.442695, %v732_v42 }
 0x245   : > { %1405 = vpow2.f32 %v733_v43 }
 0x246   : > { %1407 = vpow2.f32 %v735_v44 }
 0x24f   : > { %v1406_v45 = vpop.eup %1405 }
 0x250   : > { %v1408_v46 = vpop.eup %1407  ;;  %v737_v49 = vsel %vm617_vm10, %v1406_v45, 0.0 }
 0x251   : > { %v739_v50 = vsel %vm724_vm9, %v737_v49, 0.0  ;;  %v738_v51 = vsel %vm618_vm8, %v1408_v46, 0.0 }
 0x252   : > { %740 = vadd.xlane.f32.xlu1 %v739_v50  ;;  %v742_v52 = vsel %vm724_vm9, %v738_v51, 0.0  ;;  %v532_v50 = vunpack.c.l.bf16 %v1584_v3 }
 0x256   : > { %743 = vadd.xlane.f32.xlu1 %v742_v52 }
 0x2df   : > { %v741_v53 = vpop.xlane.xlu1 %740 }
 0x2e0   : > { %v745_v54 = vmax.f32 %v741_v53, 1e-30 }
 0x2e2   : > { %1409 = vrcp.f32 %v745_v54 }
 0x2e3   : > { %v744_v55 = vpop.xlane.xlu1 %743 }
 0x2e4   : > { %v746_v56 = vmax.f32 %v744_v55, 1e-30 }
 0x2e6   : > { %1411 = vrcp.f32 %v746_v56 }
 0x2ec   : > { %v1410_v59 = vpop.eup %1409 }
 0x2ed   : > { %v749_v60 = vmul.f32 %v1410_v59, %v737_v49  ;;  %v523_v49 = vunpack.c.h.bf16 %v1586_v4 }
 0x2ef   : > { %v761_v61 = vrot.slane %v749_v60, %v760_v57  ;;  %v754_v62 = vrot.slane %v749_v60, %v753_v58  ;;  %v768_v10 = vrot.slane %v749_v60, %v767_v47  ;;  %v775_v14 = vrot.slane %v749_v60, %v774_v1 }
 0x2f0   : > { %v1412_v63 = vpop.eup %1411  ;;  %v782_v11 = vrot.slane %v749_v60, %v781_v13  ;;  %v789_v19 = vrot.slane %v749_v60, %v788_v16  ;;  %v796_v26 = vrot.slane %v749_v60, %v795_v18  ;;  %v803_v27 = vrot.slane %v749_v60, %v802_v21 }
 0x2f1   : > { %v750_v0 = vmul.f32 %v1412_v63, %v738_v51  ;;  %763 = vbcast.lane.b32.xlu0 %v761_v61, 256  ;;  %756 = vbcast.lane.b32.xlu1 %v754_v62, 256  ;;  %v524_v61 = vunpack.c.l.bf16 %v1590_v6  ;;  %v533_v62 = vunpack.c.h.bf16 %v1584_v3 }
 0x2f3   : > { %v831_v12 = vrot.slane %v750_v0, %v774_v1  ;;  %v838_v15 = vrot.slane %v750_v0, %v781_v13  ;;  %v845_v17 = vrot.slane %v750_v0, %v788_v16  ;;  %v852_v20 = vrot.slane %v750_v0, %v795_v18 }
 0x2f4   : > { %v859_v22 = vrot.slane %v750_v0, %v802_v21  ;;  %v810_v23 = vrot.slane %v750_v0, %v753_v58  ;;  %v817_v24 = vrot.slane %v750_v0, %v760_v57  ;;  %v824_v25 = vrot.slane %v750_v0, %v767_v47 }
 0x2f5   : > { %770 = vbcast.lane.b32.xlu1 %v768_v10, 256  ;;  %833 = vbcast.lane.b32.xlu0 %v831_v12, 256 }
 0x2f9   : > { %777 = vbcast.lane.b32.xlu1 %v775_v14, 256  ;;  %840 = vbcast.lane.b32.xlu0 %v838_v15, 256 }
 0x2fd   : > { %784 = vbcast.lane.b32.xlu1 %v782_v11, 256  ;;  %847 = vbcast.lane.b32.xlu0 %v845_v17, 256 }
 0x301   : > { %791 = vbcast.lane.b32.xlu1 %v789_v19, 256  ;;  %854 = vbcast.lane.b32.xlu0 %v852_v20, 256  ;;  %v525_v19 = vunpack.c.h.bf16 %v1590_v6  ;;  %v535_v6 = vunpack.c.h.bf16 %v1588_v5 }
 0x305   : > { %861 = vbcast.lane.b32.xlu0 %v859_v22, 256  ;;  %812 = vbcast.lane.b32.xlu1 %v810_v23, 256 }
 0x309   : > { %1127 = vrot.lane.b32.xlu0 %v750_v0, %s1478_s17  ;;  %819 = vbcast.lane.b32.xlu1 %v817_v24, 256 }
 0x30d   : > { %826 = vbcast.lane.b32.xlu1 %v824_v25, 256  ;;  %v534_v25 = vunpack.c.l.bf16 %v1588_v5 }
 0x311   : > { %798 = vbcast.lane.b32.xlu1 %v796_v26, 256 }
 0x315   : > { %805 = vbcast.lane.b32.xlu1 %v803_v27, 256 }
 0x319   : > { %1125 = vrot.lane.b32.xlu1 %v749_v60, %s1478_s17  ;;  %s1792_s17 = scalar_lea.hbm %s1844_s7, %s1260_s9 }
 0x363   : > { %v757_v32 = vpop.permute.xlu1 %756  ;;  %v764_v34 = vpop.permute.xlu0 %763 }
 0x364   : > { %v863_v35 = vmul.f32 %v757_v32, %v520_v30  ;;  %v864_v36 = vmul.f32 %v764_v34, %v521_v31  ;;  %v528_v30 = vunpack.c.l.bf16 %v1604_v8 }
 0x366   : > { %v879_v39 = vsel %vm382_vm0, %v863_v35, 0.0  ;;  %v886_v33 = vsel %vm382_vm0, %v864_v36, 0.0 }
 0x367   : > { %v880_v40 = vrot.slane %v879_v39, 4  ;;  %v887_v41 = vrot.slane %v886_v33, 4  ;;  %v771_v42 = vpop.permute.xlu1 %770  ;;  %v834_v43 = vpop.permute.xlu0 %833 }
 0x368   : > { %v865_v44 = vmul.f32 %v771_v42, %v522_v37  ;;  %v874_v45 = vmul.f32 %v834_v43, %v531_v38 }
 0x369   : > { %v881_v46 = vadd.f32 %v880_v40, %v879_v39  ;;  %v888_v2 = vadd.f32 %v887_v41, %v886_v33  ;;  %v529_v39 = vunpack.c.h.bf16 %v1604_v8  ;;  %v530_v33 = vunpack.c.l.bf16 %v1610_v9 }
 0x36a   : > { %v893_v51 = vsel %vm382_vm0, %v865_v44, 0.0  ;;  %v956_v52 = vsel %vm382_vm0, %v874_v45, 0.0  ;;  %v526_v44 = vunpack.c.l.bf16 %v1602_v7 }
 0x36b   : > { %v882_v53 = vrot.slane %v881_v46, 2  ;;  %v889_v54 = vrot.slane %v888_v2, 2  ;;  %v894_v55 = vrot.slane %v893_v51, 4  ;;  %v957_v56 = vrot.slane %v956_v52, 4  ;;  %v778_v57 = vpop.permute.xlu1 %777  ;;  %v841_v58 = vpop.permute.xlu0 %840 }
 0x36c   : > { %v866_v59 = vmul.f32 %v778_v57, %v523_v49  ;;  %v875_v60 = vmul.f32 %v841_v58, %v532_v50 }
 0x36d   : > { %v883_v47 = vadd.f32 %v882_v53, %v881_v46  ;;  %v890_v4 = vadd.f32 %v889_v54, %v888_v2  ;;  %v895_v63 = vadd.f32 %v894_v55, %v893_v51  ;;  %v958_v0 = vadd.f32 %v957_v56, %v956_v52 }
 0x36e   : > { %v900_v12 = vsel %vm382_vm0, %v866_v59, 0.0  ;;  %v963_v13 = vsel %vm382_vm0, %v875_v60, 0.0  ;;  %v527_v59 = vunpack.c.h.bf16 %v1602_v7 }
 0x36f   : > { %v785_v1 = vpop.permute.xlu1 %784  ;;  %v848_v10 = vpop.permute.xlu0 %847  ;;  %v884_v16 = vrot.slane %v883_v47, 1  ;;  %v891_v11 = vrot.slane %v890_v4, 1  ;;  %v896_v17 = vrot.slane %v895_v63, 2  ;;  %v959_v18 = vrot.slane %v958_v0, 2 }
 0x370   : > { %v867_v14 = vmul.f32 %v785_v1, %v524_v61  ;;  %v876_v15 = vmul.f32 %v848_v10, %v533_v62  ;;  %v901_v3 = vrot.slane %v900_v12, 4  ;;  %v964_v21 = vrot.slane %v963_v13, 4 }
 0x371   : > { %v885_v26 = vadd.f32 %v884_v16, %v883_v47  ;;  %v892_v27 = vadd.f32 %v891_v11, %v890_v4  ;;  %v897_v28 = vadd.f32 %v896_v17, %v895_v63  ;;  %v960_v48 = vadd.f32 %v959_v18, %v958_v0 }
 0x372   : > { %v907_v23 = vsel %vm382_vm0, %v867_v14, 0.0  ;;  %v970_v24 = vsel %vm382_vm0, %v876_v15, 0.0  ;;  %v902_v32 = vadd.f32 %v901_v3, %v900_v12  ;;  %v965_v34 = vadd.f32 %v964_v21, %v963_v13 }
 0x373   : > { %v792_v20 = vpop.permute.xlu1 %791  ;;  %v855_v22 = vpop.permute.xlu0 %854  ;;  %v908_v35 = vrot.slane %v907_v23, 4  ;;  %v971_v36 = vrot.slane %v970_v24, 4  ;;  %v991_v40 = vpack.c.bf16 %v885_v26, %v885_v26  ;;  %v992_v41 = vpack.c.bf16 %v892_v27, %v892_v27 }
 0x374   : > { %v868_v29 = vmul.f32 %v792_v20, %v525_v19  ;;  %v877_v38 = vmul.f32 %v855_v22, %v534_v25  ;;  %v898_v42 = vrot.slane %v897_v28, 1  ;;  %v961_v45 = vrot.slane %v960_v48, 1 }
 0x375   : > { %v903_v50 = vrot.slane %v902_v32, 2  ;;  %v966_v51 = vrot.slane %v965_v34, 2  ;;  %v909_v52 = vadd.f32 %v908_v35, %v907_v23  ;;  %v972_v53 = vadd.f32 %v971_v36, %v970_v24 }
 0x376   : > { %v914_v37 = vsel %vm382_vm0, %v868_v29, 0.0  ;;  %v977_v5 = vsel %vm382_vm0, %v877_v38, 0.0  ;;  %v1034_v56 = vunpack.c.l.b16 %v991_v40  ;;  %v1035_v57 = vunpack.c.l.b16 %v992_v41 }
 0x377   : > { %v813_v31 = vpop.permute.xlu1 %812  ;;  %v862_v43 = vpop.permute.xlu0 %861  ;;  %v915_v46 = vrot.slane %v914_v37, 4  ;;  %v978_v8 = vrot.slane %v977_v5, 4  ;;  %v899_v58 = vadd.f32 %v898_v42, %v897_v28  ;;  %v1751_v60 = vadd.f32 %v961_v45, %v960_v48 }
 0x378   : > { %v871_v2 = vmul.f32 %v813_v31, %v528_v30  ;;  %v878_v55 = vmul.f32 %v862_v43, %v535_v6  ;;  %v904_v63 = vadd.f32 %v903_v50, %v902_v32  ;;  %v910_v0 = vrot.slane %v909_v52, 2 }
 0x379   : > { %v916_v54 = vadd.f32 %v915_v46, %v914_v37  ;;  %v979_v61 = vadd.f32 %v978_v8, %v977_v5  ;;  %v973_v1 = vrot.slane %v972_v53, 2  ;;  %v967_v12 = vadd.f32 %v966_v51, %v965_v34 }
 0x37a   : > { %v935_v9 = vsel %vm382_vm0, %v871_v2, 0.0  ;;  %v984_v47 = vsel %vm382_vm0, %v878_v55, 0.0  ;;  %v1755_v16 = vsel %vm699_vm1, %v1035_v57, %v1034_v56  ;;  %v993_v11 = vpack.c.bf16 %v899_v58, %v899_v58 }
 0x37b   : > { %v820_v49 = vpop.permute.xlu1 %819  ;;  %v936_v62 = vrot.slane %v935_v9, 4  ;;  %v985_v10 = vrot.slane %v984_v47, 4  ;;  %v917_v13 = vrot.slane %v916_v54, 2  ;;  %v1002_v18 = vpack.c.bf16 %v1751_v60, %v1751_v60 }
 0x37c   : > { %v872_v15 = vmul.f32 %v820_v49, %v529_v39  ;;  %v980_v19 = vrot.slane %v979_v61, 2  ;;  %v911_v22 = vadd.f32 %v910_v0, %v909_v52  ;;  %v974_v23 = vadd.f32 %v973_v1, %v972_v53 }
 0x37d   : > { %v937_v14 = vadd.f32 %v936_v62, %v935_v9  ;;  %v986_v7 = vadd.f32 %v985_v10, %v984_v47  ;;  %v918_v26 = vadd.f32 %v917_v13, %v916_v54  ;;  %v905_v29 = vrot.slane %v904_v63, 1 }
 0x37e   : > { %v942_v3 = vsel %vm382_vm0, %v872_v15, 0.0  ;;  %v968_v30 = vrot.slane %v967_v12, 1  ;;  %v1761_v32 = vunpack.c.l.b16 %v993_v11  ;;  %v981_v34 = vadd.f32 %v980_v19, %v979_v61 }
 0x37f   : > { %v827_v4 = vpop.permute.xlu1 %826  ;;  %v938_v20 = vrot.slane %v937_v14, 2  ;;  %v943_v24 = vrot.slane %v942_v3, 4  ;;  %v987_v28 = vrot.slane %v986_v7, 2  ;;  %v912_v38 = vrot.slane %v911_v22, 1 }
 0x380   : > { %v873_v17 = vmul.f32 %v827_v4, %v530_v33  ;;  %v975_v41 = vrot.slane %v974_v23, 1  ;;  %v919_v42 = vrot.slane %v918_v26, 1  ;;  %v906_v49 = vadd.f32 %v905_v29, %v904_v63 }
 0x381   : > { %v939_v27 = vadd.f32 %v938_v20, %v937_v14  ;;  %v944_v31 = vadd.f32 %v943_v24, %v942_v3  ;;  %v988_v43 = vadd.f32 %v987_v28, %v986_v7  ;;  %v969_v50 = vadd.f32 %v968_v30, %v967_v12 }
 0x382   : > { %v949_v25 = vsel %vm382_vm0, %v873_v17, 0.0  ;;  %v982_v51 = vrot.slane %v981_v34, 1  ;;  %v913_v53 = vadd.f32 %v912_v38, %v911_v22  ;;  %v976_v55 = vadd.f32 %v975_v41, %v974_v23 }
 0x383   : > { %v799_v21 = vpop.permute.xlu1 %798  ;;  %v950_v48 = vrot.slane %v949_v25, 4  ;;  %v940_v35 = vrot.slane %v939_v27, 1  ;;  %v945_v39 = vrot.slane %v944_v31, 2  ;;  %v920_v56 = vadd.f32 %v919_v42, %v918_v26 }
 0x384   : > { %v869_v6 = vmul.f32 %v799_v21, %v526_v44  ;;  %v989_v57 = vrot.slane %v988_v43, 1  ;;  %v994_v4 = vpack.c.bf16 %v906_v49, %v906_v49  ;;  %v1003_v0 = vpack.c.bf16 %v969_v50, %v969_v50  ;;  %v1251_v49 = vld [vmem:[%s1843_s6] ss:$0 sm:$0xff] }
 0x385   : > { %v951_v36 = vadd.f32 %v950_v48, %v949_v25  ;;  %v941_v46 = vadd.f32 %v940_v35, %v939_v27  ;;  %v946_v5 = vadd.f32 %v945_v39, %v944_v31  ;;  %v983_v1 = vadd.f32 %v982_v51, %v981_v34 }
 0x386   : > { %v921_v33 = vsel %vm382_vm0, %v869_v6, 0.0  ;;  %v995_v63 = vpack.c.bf16 %v913_v53, %v913_v53  ;;  %v1004_v15 = vpack.c.bf16 %v976_v55, %v976_v55  ;;  %v996_v11 = vpack.c.bf16 %v920_v56, %v920_v56  ;;  %v1128_v55 = vpop.permute.xlu0 %1127 }
 0x387   : > { %v806_v37 = vpop.permute.xlu1 %805  ;;  %v952_v45 = vrot.slane %v951_v36, 2  ;;  %v922_v2 = vrot.slane %v921_v33, 4  ;;  %v947_v54 = vrot.slane %v946_v5, 1  ;;  %v990_v7 = vadd.f32 %v989_v57, %v988_v43 }
 0x388   : > { %v870_v40 = vmul.f32 %v806_v37, %v527_v59  ;;  %v999_v59 = vpack.c.bf16 %v941_v46, %v941_v46  ;;  %v1045_v22 = vunpack.c.l.b16 %v1002_v18  ;;  %v1037_v23 = vunpack.c.l.b16 %v994_v4 }
 0x389   : > { %v953_v52 = vadd.f32 %v952_v45, %v951_v36  ;;  %v923_v8 = vadd.f32 %v922_v2, %v921_v33  ;;  %v948_v61 = vadd.f32 %v947_v54, %v946_v5  ;;  %v1005_v24 = vpack.c.bf16 %v983_v1, %v983_v1 }
 0x38a   : > { %v928_v44 = vsel %vm382_vm0, %v870_v40, 0.0  ;;  %v1042_v19 = vunpack.c.l.b16 %v999_v59  ;;  %v1046_v26 = vunpack.c.l.b16 %v1003_v0  ;;  %v1038_v29 = vunpack.c.l.b16 %v995_v63 }
 0x38b   : > { %v929_v9 = vrot.slane %v928_v44, 4  ;;  %v954_v58 = vrot.slane %v953_v52, 1  ;;  %v924_v62 = vrot.slane %v923_v8, 2  ;;  %v1000_v12 = vpack.c.bf16 %v948_v61, %v948_v61  ;;  %v1126_v54 = vpop.permute.xlu1 %1125 }
 0x38c   : > { %v1047_v30 = vunpack.c.l.b16 %v1004_v15  ;;  %v1039_v31 = vunpack.c.l.b16 %v996_v11  ;;  %v1006_v34 = vpack.c.bf16 %v990_v7, %v990_v7  ;;  %v1051_v60 = vsel %vm701_vm2, %v1761_v32, %v1755_v16 }
 0x38d   : > { %v930_v47 = vadd.f32 %v929_v9, %v928_v44  ;;  %v955_v10 = vadd.f32 %v954_v58, %v953_v52  ;;  %v925_v13 = vadd.f32 %v924_v62, %v923_v8  ;;  %v1043_v20 = vunpack.c.l.b16 %v1000_v12 }
 0x38e   : > { %v1048_v18 = vunpack.c.l.b16 %v1005_v24  ;;  %v1052_v39 = vsel %vm703_vm3, %v1037_v23, %v1051_v60  ;;  %v1049_v46 = vunpack.c.l.b16 %v1006_v34 }
 0x38f   : > { %v931_v14 = vrot.slane %v930_v47, 2  ;;  %v1001_v17 = vpack.c.bf16 %v955_v10, %v955_v10  ;;  %v926_v3 = vrot.slane %v925_v13, 1  ;;  %v1057_v27 = vsel %vm699_vm1, %v1043_v20, %v1042_v19 }
 0x390   : > { %v1053_v42 = vsel %vm705_vm4, %v1038_v29, %v1052_v39 }
 0x391   : > { %v932_v21 = vadd.f32 %v931_v14, %v930_v47  ;;  %v1044_v25 = vunpack.c.l.b16 %v1001_v17  ;;  %v927_v28 = vadd.f32 %v926_v3, %v925_v13  ;;  %v1054_v45 = vsel %vm707_vm5, %v1039_v31, %v1053_v42 }
 0x393   : > { %v933_v48 = vrot.slane %v932_v21, 1  ;;  %v1058_v6 = vsel %vm701_vm2, %v1044_v25, %v1057_v27  ;;  %v997_v36 = vpack.c.bf16 %v927_v28, %v927_v28 }
 0x394   : > { %v1059_v35 = vsel %vm703_vm3, %v1045_v22, %v1058_v6 }
 0x395   : > { %v934_v37 = vadd.f32 %v933_v48, %v932_v21  ;;  %v1060_v38 = vsel %vm705_vm4, %v1046_v26, %v1059_v35  ;;  %v1040_v33 = vunpack.c.l.b16 %v997_v36 }
 0x396   : > { %v1061_v41 = vsel %vm707_vm5, %v1047_v30, %v1060_v38 }
 0x397   : > { %v998_v40 = vpack.c.bf16 %v934_v37, %v934_v37  ;;  %v1062_v43 = vsel %vm709_vm6, %v1048_v18, %v1061_v41  ;;  %v1055_v16 = vsel %vm709_vm6, %v1040_v33, %v1054_v45 }
 0x398   : > { %v1063_v2 = vsel %vm711_vm7, %v1049_v46, %v1062_v43 }
 0x399   : > { %v1041_v5 = vunpack.c.l.b16 %v998_v40 }
 0x39b   : > { %v1056_v32 = vsel %vm711_vm7, %v1041_v5, %v1055_v16 }
 0x39c   : > { %v1064_v44 = vpack.c.b16 %v1063_v2, %v1056_v32 }
 0x39e   : > { %1299 = vmatmul.mubr.msk.bf16.vlgmr.msra.gmra.mrb[4].mxu1 %vm382_vm0, %v1064_v44 }
 0x471   : > { %v1114_v50 = vpop.f32.mrb[4].mxu1 }
 0x472   : > { %v1115_v51 = vadd.f32 %v1251_v49, %v1114_v50  ;;  %v1300_v52 = vpop.f32.mrb[5].mxu1 }
 0x473   : > { %v1117_v53 = vpop.f32.mrb[6].mxu1 }
 0x474   : > { %1121 = vst [vmem:[%s288_s13] sm:$0xff] %v1115_v51  ;;  %v1118_v8 = vadd.f32 %v1251_v49, %v1117_v53  ;;  %v1301_v9 = vpop.f32.mrb[7].mxu1 }
 0x475   : > { %1132 = vst.msk [vmem:[%s288_s13] sm:$0xff] %vm1131_vm12, %v1126_v54 }
 0x476   : > { %1122 = vst [vmem:[%s288_s13 + $0x8] sm:$0xff] %v1118_v8 }
 0x477   : > { %1133 = vst.msk [vmem:[%s288_s13 + $0x8] sm:$0xff] %vm1131_vm12, %v1128_v55 }
 0x478   : > { %1426 = shalt.err (!%p1423_p4)
}
 0x479   : > { %s1427_s22 = scalar_lea.hbm %s1792_s17, 256  ;;  %s1431_s8 = scalar_lea.hbm %s1844_s7, 512 }
 0x47a   : > { %p1428_p7 = scmp.ne.s32.totalorder %s1792_s17, %s1427_s22  ;;  %p1432_p10 = scmp.lt.u32.totalorder %s1792_s17, %s1844_s7 }
 0x47b   : > { %p1433_p11 = scmp.lt.u32.totalorder %s1431_s8, %s1427_s22  ;;  %p1435_p13 = scmp.lt.u32.totalorder %s1427_s22, %s1792_s17 }
 0x47c   : > { %p1429_p8 = pnand %p1428_p7, %p1562_p5 }
 0x47d   : > { %p1434_p12 = por %p1433_p11, %p1432_p10 }
 0x47e   : > { %p1430_p9 = pneg %p1429_p8 }
 0x47f   : > { %p1436_p0 = por %p1435_p13, %p1434_p12 }
 0x481   : > { %p1437_p1 = pnand %p1436_p0, %p1430_p9 }
 0x483   : > { %1440 = shalt.err (!%p1437_p1)
}
 0x484   : > { %s1482_s15 = smov 128   ;;  %s1483_s16 = smov 8  }
 0x485   : > { %1306 = dma.vmem_to_hbm [thread:$0]  (%p1562_p5), %s1794_s14, 256, %s1792_s17, %s1796_s28, %s1482_s15, %s1482_s15, %s1483_s16  }
 0x486 PF: > { %p1312_p2 = scmp.ge.s32.totalorder %s1475_s27, 2  ;;  %s1163_s18 = sand.u32 1, %s1463_s24  }
 0x487   : > { %s1164_s19 = scalar_lea.sflag [#allocation3], %s1163_s18 }
 0x488   : > { %p1309_p3 = pnand %p1312_p2, %p1566_p6 }
 0x48a   : > { %1458 = dma.done.wait (!%p1309_p3), %s1164_s19, 256  }
 0x48b   : > { %1460 = vsyncadd (!%p1309_p3), %s1164_s19, 4294967040  ;;  %p17_p4 = scmp.ge.s32.totalorder %s1549_s30, 4   ;;  %s1847_s24 = smov %s1467_s25 }
 0x48c   : > { %s1848_s25 = smov %s1471_s26  ;;  %s1849_s26 = smov %s1560_s10 }
 0x48d   : > { %s1850_s27 = smov %s1549_s30  ;;  %19 = sbr.rel (!%p17_p4) target bundleno = 3 (0x3), region = 86 }
 0x494   :  { %1169 = vsyncpa [#allocation3], 1 }
 0x495   :  { %1171 = vsyncpa [#allocation3 + $0x1], 1 }

// kernel: tpu_custom_call.1
= control target key start
LH: loop header
LB: loop body
LE: loop exit
PB: predicated region body
PF: predicated region fallthrough
CT: control target
= control target key end

     0   :  { %12 = vsyncpa [#allocation3], 0  ;;  %s1837_s0 = inlined_call_operand.vmem [shape: s32[32,1], index: 0, kind: input, shape index: {}]   ;;  %s1838_s1 = inlined_call_operand.vmem [shape: bf16[256,32], index: 1, kind: input, shape index: {}]   ;;  %s1839_s2 = inlined_call_operand.vmem [shape: bf16[32,32], index: 2, kind: input, shape index: {}]   ;;  %s1840_s3 = inlined_call_operand.vmem [shape: f32[1,32], index: 3, kind: input, shape index: {}]   ;;  %s1841_s4 = inlined_call_operand.vmem [shape: f32[1,32], index: 4, kind: input, shape index: {}]   ;;  %s1842_s5 = inlined_call_operand.vmem [shape: bf16[32,128], index: 5, kind: input, shape index: {}]   ;;  %s1843_s6 = inlined_call_operand.vmem [shape: f32[1,128], index: 6, kind: input, shape index: {}]   ;;  %s1844_s7 = inlined_call_operand.hbm [shape: f32[32,128], index: 7, kind: output, shape index: {}]  }
   0x1   :  { %14 = vsyncpa [#allocation3 + $0x1], 0  ;;  %s1524_s24 = smov 0   ;;  %s1526_s25 = smov 0  }
   0x2   :  { %s1528_s26 = smov 0   ;;  %s1530_s27 = smov 0  }
   0x3 LB: > { %s1545_s28 = sadd.s32 4294967295, %s1475_s27   ;;  %s1222_s29 = sadd.s32 4294967294, %s1475_s27   ;;  %s1475_s27 = sphi %s1530_s27, %s1850_s27   ;;  %s1471_s26 = sphi %s1528_s26, %s1849_s26   ;;  %s1467_s25 = sphi %s1526_s25, %s1848_s25   ;;  %s1463_s24 = sphi %s1524_s24, %s1847_s24  }
   0x4   : > { %s1549_s30 = sadd.s32 1, %s1475_s27   ;;  %s184_s8 = sadd.s32 1, %s1471_s26 }
   0x5   : > { %s181_s9 = ssub.s32 %s1475_s27, %s1549_s30  ;;  %p194_p0 = scmp.ne.s32.totalorder %s1471_s26, %s1467_s25 }
   0x6   : > { %p182_p1 = scmp.eq.s32.totalorder %s181_s9, 0  ;;  %p195_p2 = scmp.eq.s32.totalorder %s1545_s28, 1 }
   0x7   : > { %p200_p3 = scmp.ne.s32.totalorder %s1467_s25, %s1463_s24  ;;  %p201_p4 = scmp.eq.s32.totalorder %s1222_s29, 1 }
   0x8   : > { %s1560_s10 = scalar_select %p182_p1, %s1471_s26, %s184_s8  }
   0x9   : > { %p1562_p5 = por %p195_p2, %p194_p0  ;;  %p1566_p6 = por %p201_p4, %p200_p3 }
   0xa   : > { %p1225_p7 = scmp.ge.s32.totalorder %s1475_s27, 1  ;;  %p252_p8 = scmp.lt.s32.totalorder %s1475_s27, 3 }
   0xc   : > { %p253_p9 = pnand %p1225_p7, %p252_p8 }
   0xd   : > { %v1353_v0 = vld [vmem:[%s1839_s2] sm:$0xff] (!%p253_p9)   ;;  %s1229_s15 = sshll.u32 (!%p253_p9), %s1545_s28, 4  ;;  %v1354_v1 = vld [vmem:[%s1839_s2 + $0x8] sm:$0xff] (!%p253_p9)   ;;  %vm382_vm0 = vcmask (!%p253_p9), 261120   ;;  %v1477_v10 = vmov (!%p253_p9), 0   ;;  %s1227_s9 = sshll.u32 (!%p253_p9), %s1545_s28, 1 }
   0xe   : > { %256 = sbr.rel (%p253_p9) target bundleno = 1158 (0x486), region = 48  ;;  %p296_p10 = scmp.lt.s32.totalorder (!%p253_p9), %s1229_s15, 31  ;;  %1274 = vmatprep.subr.bf16.mxu0 (!%p253_p9), %v1353_v0  ;;  %1302 = vmatprep.subr.bf16.mxu1 (!%p253_p9), %v1353_v0  ;;  %v1617_v11 = vld [vmem:[%s1840_s3] ss:$0 sm:$0xff] (!%p253_p9)  ;;  %vm699_vm1 = vcmask (!%p253_p9), 1041409   ;;  %vm701_vm2 = vcmask (!%p253_p9), 1042434  }
   0xf   : > { %1275 = vmatpush3.bf16.msra.mxu0 (!%p253_p9), %v1353_v0  ;;  %1304 = vmatpush3.bf16.msra.mxu1 (!%p253_p9), %v1353_v0  ;;  %v1631_v33 = vld [vmem:[%s1841_s4] ss:$0 sm:$0xff] (!%p253_p9)  ;;  %p290_p11 = scmp.lt.s32.totalorder (!%p253_p9), %s1227_s9, 3  ;;  %vm703_vm3 = vcmask (!%p253_p9), 1043459   ;;  %vm705_vm4 = vcmask (!%p253_p9), 1044484   ;;  %vm707_vm5 = vcmask (!%p253_p9), 1045509  }
  0x10   : > { %1276 = vmatprep.subr.bf16.mxu0 (!%p253_p9), %v1354_v1  ;;  %1303 = vmatprep.subr.bf16.mxu1 (!%p253_p9), %v1354_v1  ;;  %vm709_vm6 = vcmask (!%p253_p9), 1046534   ;;  %vm711_vm7 = vcmask (!%p253_p9), 1047559   ;;  %vm724_vm9 = vcmask (!%p253_p9), 64512   ;;  %s1478_s17 = smov (!%p253_p9), 2   ;;  %vm1480_vm11 = vmmov (!%p253_p9), 0   ;;  %s286_s22 = sand.u32 (!%p253_p9), 1, %s1467_s25  }
  0x11   : > { %1352 = vset.pattern.permute.xlu1 (!%p253_p9), %v1477_v10  ;;  %1351 = vset.pattern.permute.xlu0 (!%p253_p9), %v1477_v10  ;;  %s1226_s23 = sshll.u32 (!%p253_p9), %s286_s22, 4  ;;  %vm1131_vm12 = vcmask (!%p253_p9), 80912   ;;  %s1481_s19 = smov (!%p253_p9), [#allocation2]  }
  0x12   : > { %s1417_s20 = sshll.u32 (!%p253_p9), %s1481_s19, 4  ;;  %s1418_s20 = int_to_ptr.vmem [resolvable:$false] %s1417_s20 }
  0x13   : > { %1277 = vmatpush3.bf16.msra.mxu0 (!%p253_p9), %v1354_v1  ;;  %1305 = vmatpush3.bf16.msra.mxu1 (!%p253_p9), %v1354_v1 }
  0x15   : > { %s1852_s15 = smov (!%p296_p10, %s1229_s15), 31  ;;  %s1854_s9 = smov (!%p290_p11, %s1227_s9), 3 }
  0x16   : > { %s1230_s18 = sshll.u32 %s1852_s15, 2  ;;  %s1228_s13 = sshll.u32 %s1854_s9, 3 }
  0x17   : > { %s299_s21 = scalar_lea.vmem %s1838_s1, %s1230_s18  ;;  %s293_s16 = scalar_lea.vmem %s1837_s0, %s1228_s13 }
  0x18   : > { %v1582_v2 = vld [vmem:[%s299_s21] sm:$0xff]   ;;  %v1584_v3 = vld [vmem:[%s299_s21 + $0x30] sm:$0xff]   ;;  %v1586_v4 = vld [vmem:[%s299_s21 + $0x8] sm:$0xff]   ;;  %s1260_s9 = sshll.u32 %s1545_s28, 8  ;;  %s288_s13 = scalar_lea.vmem [#allocation2], %s1226_s23 }
  0x19   : > { %v1588_v5 = vld [vmem:[%s299_s21 + $0x38] sm:$0xff]   ;;  %v1590_v6 = vld [vmem:[%s299_s21 + $0x10] sm:$0xff]   ;;  %1278 = vmatprep.mubr.msk.bf16.mxu0 %vm382_vm0, %v1582_v2  ;;  %1290 = vmatprep.mubr.msk.bf16.mxu1 %vm382_vm0, %v1584_v3  ;;  %v1604_v8 = vld [vmem:[%s299_s21 + $0x20] sm:$0xff]   ;;  %s1148_s14 = sshll.u32 %s288_s13, 4  ;;  %s1796_s28 = scalar_lea.sflag [#allocation3], %s286_s22  ;;  %s1794_s14 = int_to_ptr.vmem [resolvable:$true] %s1148_s14 }
  0x1a   : > { %1279 = vmatmul.mubr.msk.bf16.vlgmr.msra.gmra.mrb[0].mxu0 %vm382_vm0, %v1586_v4  ;;  %1291 = vmatmul.mubr.msk.bf16.vlgmr.msra.gmra.mrb[0].mxu1 %vm382_vm0, %v1588_v5  ;;  %v1602_v7 = vld [vmem:[%s299_s21 + $0x18] sm:$0xff]   ;;  %v1610_v9 = vld [vmem:[%s299_s21 + $0x28] sm:$0xff]   ;;  %s1413_s18 = scalar_lea.vmem %s1794_s14, 256  ;;  %s1419_s21 = scalar_lea.vmem %s1418_s20, 512 }
  0x1b   : > { %1282 = vmatprep.mubr.msk.bf16.mxu0 %vm382_vm0, %v1590_v6  ;;  %p1414_p12 = scmp.ne.s32.totalorder %s1794_s14, %s1413_s18  ;;  %p1420_p1 = scmp.lt.s32.totalorder %s1794_s14, %s1418_s20 }
  0x1c   : > { %p1421_p2 = scmp.lt.s32.totalorder %s1419_s21, %s1413_s18 }
  0x1d   : > { %p1415_p13 = pnand %p1414_p12, %p1562_p5 }
  0x1e   : > { %p1422_p3 = por %p1421_p2, %p1420_p1 }
  0x1f   : > { %p1416_p0 = pneg %p1415_p13 }
  0x21   : > { %p1423_p4 = pnand %p1422_p3, %p1416_p0 }
  0x22   : > { %1283 = vmatmul.mubr.msk.bf16.gmra.mrb[4].mxu0 %vm382_vm0, %v1602_v7 }
  0x23   : > { %1286 = vmatprep.mubr.msk.bf16.mxu0 %vm382_vm0, %v1604_v8 }
  0x2a   : > { %1287 = vmatmul.mubr.msk.bf16.gmra.mrb[8].mxu0 %vm382_vm0, %v1610_v9 }
  0xed   : > { %v1280_v12 = vpop.f32.mrb[0].mxu0  ;;  %v1292_v13 = vpop.f32.mrb[0].mxu1 }
  0xee   : > { %v450_v14 = vadd.f32 %v1280_v12, %v1617_v11  ;;  %v498_v15 = vadd.f32 %v1292_v13, %v1617_v11  ;;  %v441_v16 = vpop.f32.mrb[1].mxu0  ;;  %v489_v17 = vpop.f32.mrb[1].mxu1 }
  0xef   : > { %v442_v18 = vadd.f32 %v1617_v11, %v441_v16  ;;  %v1281_v19 = vpop.f32.mrb[2].mxu0  ;;  %v1293_v20 = vpop.f32.mrb[2].mxu1  ;;  %v490_v24 = vadd.f32 %v1617_v11, %v489_v17 }
  0xf0   : > { %1373 = vtanh.f32 %v450_v14  ;;  %v453_v21 = vadd.f32 %v1281_v19, %v1617_v11  ;;  %v444_v22 = vpop.f32.mrb[3].mxu0  ;;  %v492_v23 = vpop.f32.mrb[3].mxu1  ;;  %v501_v25 = vadd.f32 %v1293_v20, %v1617_v11 }
  0xf1   : > { %1375 = vtanh.f32 %v498_v15  ;;  %v493_v26 = vadd.f32 %v1617_v11, %v492_v23  ;;  %v445_v27 = vadd.f32 %v1617_v11, %v444_v22 }
  0xf2   : > { %1377 = vtanh.f32 %v442_v18 }
  0xf3   : > { %1379 = vtanh.f32 %v453_v21 }
  0xf4   : > { %1381 = vtanh.f32 %v490_v24 }
  0xf5   : > { %v1284_v28 = vpop.f32.mrb[4].mxu0  ;;  %1383 = vtanh.f32 %v501_v25 }
  0xf6   : > { %v466_v29 = vadd.f32 %v1284_v28, %v1617_v11  ;;  %v457_v30 = vpop.f32.mrb[5].mxu0  ;;  %1385 = vtanh.f32 %v493_v26 }
  0xf7   : > { %v1285_v31 = vpop.f32.mrb[6].mxu0  ;;  %1387 = vtanh.f32 %v445_v27  ;;  %v458_v36 = vadd.f32 %v1617_v11, %v457_v30 }
  0xf8   : > { %v460_v32 = vpop.f32.mrb[7].mxu0  ;;  %1389 = vtanh.f32 %v466_v29  ;;  %v469_v51 = vadd.f32 %v1285_v31, %v1617_v11 }
  0xf9   : > { %1391 = vtanh.f32 %v458_v36  ;;  %v461_v63 = vadd.f32 %v1617_v11, %v460_v32 }
  0xfa   : > { %v1374_v34 = vpop.eup %1373 }
  0xfb   : > { %v1376_v35 = vpop.eup %1375  ;;  %v545_v37 = vmul.f32 %v1374_v34, %v1631_v33 }
  0xfc   : > { %v1378_v38 = vpop.eup %1377  ;;  %v557_v39 = vmul.f32 %v1376_v35, %v1631_v33 }
  0xfd   : > { %v1288_v40 = vpop.f32.mrb[8].mxu0  ;;  %v565_v41 = vsel %vm382_vm0, %v545_v37, 0.0  ;;  %v543_v42 = vmul.f32 %v1378_v38, %v1631_v33  ;;  %v1380_v43 = vpop.eup %1379  ;;  %v610_v38 = vld [vmem:[%s293_s16 + $0x8] sm:$0xff] }
  0xfe   : > { %v482_v44 = vadd.f32 %v1288_v40, %v1617_v11  ;;  %v601_v45 = vsel %vm382_vm0, %v557_v39, 0.0  ;;  %566 = vadd.xlane.f32.xlu0 %v565_v41  ;;  %v473_v46 = vpop.f32.mrb[9].mxu0  ;;  %v1382_v47 = vpop.eup %1381  ;;  %v546_v58 = vmul.f32 %v1380_v43, %v1631_v33  ;;  %v609_v39 = vld [vmem:[%s293_s16] sm:$0xff] }
  0xff   : > { %602 = vadd.xlane.f32.xlu1 %v601_v45  ;;  %v474_v48 = vadd.f32 %v1617_v11, %v473_v46  ;;  %v1289_v49 = vpop.f32.mrb[10].mxu0  ;;  %v1384_v50 = vpop.eup %1383  ;;  %v555_v52 = vmul.f32 %v1382_v47, %v1631_v33  ;;  %v559_v56 = vsel %vm382_vm0, %v543_v42, 0.0 }
 0x100   : > { %1393 = vtanh.f32 %v482_v44  ;;  %v485_v53 = vadd.f32 %v1289_v49, %v1617_v11  ;;  %v476_v54 = vpop.f32.mrb[11].mxu0  ;;  %v1386_v55 = vpop.eup %1385  ;;  %v558_v57 = vmul.f32 %v1384_v50, %v1631_v33  ;;  %v568_v10 = vsel %vm382_vm0, %v546_v58, 0.0 }
 0x101   : > { %1395 = vtanh.f32 %v474_v48  ;;  %v1388_v59 = vpop.eup %1387  ;;  %v595_v60 = vsel %vm382_vm0, %v555_v52, 0.0  ;;  %v477_v61 = vadd.f32 %v1617_v11, %v476_v54  ;;  %v556_v1 = vmul.f32 %v1386_v55, %v1631_v33 }
 0x102   : > { %560 = vadd.xlane.f32.xlu0 %v559_v56  ;;  %1397 = vtanh.f32 %v485_v53  ;;  %v1390_v62 = vpop.eup %1389  ;;  %v604_v0 = vsel %vm382_vm0, %v558_v57, 0.0  ;;  %v544_v12 = vmul.f32 %v1388_v59, %v1631_v33  ;;  %v607_v44 = vlaneseq }
 0x103   : > { %596 = vadd.xlane.f32.xlu1 %v595_v60  ;;  %1399 = vtanh.f32 %v469_v51  ;;  %v549_v13 = vmul.f32 %v1390_v62, %v1631_v33  ;;  %v598_v14 = vsel %vm382_vm0, %v556_v1, 0.0  ;;  %v1392_v15 = vpop.eup %1391 }
 0x104   : > { %1401 = vtanh.f32 %v477_v61  ;;  %v562_v16 = vsel %vm382_vm0, %v544_v12, 0.0  ;;  %v547_v23 = vmul.f32 %v1392_v15, %v1631_v33  ;;  %v1676_v47 = vand.u32 127, %v607_v44 }
 0x105   : > { %1403 = vtanh.f32 %v461_v63  ;;  %v577_v19 = vsel %vm382_vm0, %v549_v13, 0.0  ;;  %v1678_v48 = vshrl.u32 %v607_v44, 7 }
 0x106   : > { %569 = vadd.xlane.f32.xlu0 %v568_v10  ;;  %v571_v28 = vsel %vm382_vm0, %v547_v23, 0.0 }
 0x107   : > { %605 = vadd.xlane.f32.xlu1 %v604_v0  ;;  %v637_v51 = vsub.s32 %v1676_v47, %v1678_v48 }
 0x10a   : > { %v1394_v11 = vpop.eup %1393  ;;  %563 = vadd.xlane.f32.xlu0 %v562_v16 }
 0x10b   : > { %v1396_v17 = vpop.eup %1395  ;;  %599 = vadd.xlane.f32.xlu1 %v598_v14  ;;  %v553_v18 = vmul.f32 %v1394_v11, %v1631_v33 }
 0x10c   : > { %v551_v20 = vmul.f32 %v1396_v17, %v1631_v33  ;;  %v1398_v21 = vpop.eup %1397 }
 0x10d   : > { %v589_v22 = vsel %vm382_vm0, %v553_v18, 0.0  ;;  %v1400_v24 = vpop.eup %1399  ;;  %v554_v26 = vmul.f32 %v1398_v21, %v1631_v33 }
 0x10e   : > { %578 = vadd.xlane.f32.xlu0 %v577_v19  ;;  %v583_v25 = vsel %vm382_vm0, %v551_v20, 0.0  ;;  %v1402_v27 = vpop.eup %1401  ;;  %v550_v29 = vmul.f32 %v1400_v24, %v1631_v33 }
 0x10f   : > { %590 = vadd.xlane.f32.xlu1 %v589_v22  ;;  %v1404_v30 = vpop.eup %1403  ;;  %v592_v31 = vsel %vm382_vm0, %v554_v26, 0.0  ;;  %v552_v32 = vmul.f32 %v1402_v27, %v1631_v33 }
 0x110   : > { %v580_v34 = vsel %vm382_vm0, %v550_v29, 0.0  ;;  %v548_v35 = vmul.f32 %v1404_v30, %v1631_v33 }
 0x111   : > { %v586_v36 = vsel %vm382_vm0, %v552_v32, 0.0 }
 0x112   : > { %572 = vadd.xlane.f32.xlu0 %v571_v28  ;;  %v574_v37 = vsel %vm382_vm0, %v548_v35, 0.0 }
 0x113   : > { %584 = vadd.xlane.f32.xlu1 %v583_v25 }
 0x116   : > { %581 = vadd.xlane.f32.xlu0 %v580_v34 }
 0x117   : > { %593 = vadd.xlane.f32.xlu1 %v592_v31 }
 0x11a   : > { %575 = vadd.xlane.f32.xlu0 %v574_v37 }
 0x11b   : > { %587 = vadd.xlane.f32.xlu1 %v586_v36 }
 0x12c   : > { %615 = vperm.xlu1 %1352, %v610_v38  }
 0x130   : > { %612 = vperm.xlu0 %1351, %v609_v39  }
 0x18b   : > { %v567_v33 = vpop.xlane.xlu0 %566 }
 0x18c   : > { %v603_v40 = vpop.xlane.xlu1 %602  ;;  %v646_v58 = vrot.slane %v567_v33, %v637_v51 }
 0x18d   : > { %v694_v26 = vrot.slane %v603_v40, %v637_v51 }
 0x18f   : > { %v561_v41 = vpop.xlane.xlu0 %560 }
 0x190   : > { %v597_v42 = vpop.xlane.xlu1 %596  ;;  %v638_v55 = vrot.slane %v561_v41, %v637_v51 }
 0x191   : > { %v686_v20 = vrot.slane %v597_v42, %v637_v51 }
 0x193   : > { %v570_v43 = vpop.xlane.xlu0 %569 }
 0x194   : > { %v606_v45 = vpop.xlane.xlu1 %605  ;;  %v650_v63 = vrot.slane %v570_v43, %v637_v51 }
 0x195   : > { %v698_v29 = vrot.slane %v606_v45, %v637_v51 }
 0x197   : > { %v564_v46 = vpop.xlane.xlu0 %563 }
 0x198   : > { %v600_v49 = vpop.xlane.xlu1 %599  ;;  %v642_v53 = vrot.slane %v564_v46, %v637_v51 }
 0x199   : > { %v690_v23 = vrot.slane %v600_v49, %v637_v51 }
 0x19a   : > { %v700_v57 = vsel %vm699_vm1, %v642_v53, %v638_v55 }
 0x19b   : > { %v579_v50 = vpop.xlane.xlu0 %578  ;;  %v702_v61 = vsel %vm701_vm2, %v646_v58, %v700_v57  ;;  %v760_v57 = vsub.s32 1, %v1678_v48  ;;  %v753_v58 = vsub.s32 0, %v1678_v48 }
 0x19c   : > { %v591_v52 = vpop.xlane.xlu1 %590  ;;  %v704_v12 = vsel %vm703_vm3, %v650_v63, %v702_v61  ;;  %v662_v18 = vrot.slane %v579_v50, %v637_v51 }
 0x19d   : > { %v678_v10 = vrot.slane %v591_v52, %v637_v51 }
 0x19f   : > { %v573_v54 = vpop.xlane.xlu0 %572 }
 0x1a0   : > { %v585_v56 = vpop.xlane.xlu1 %584  ;;  %v654_v62 = vrot.slane %v573_v54, %v637_v51 }
 0x1a1   : > { %v670_v0 = vrot.slane %v585_v56, %v637_v51 }
 0x1a2   : > { %v706_v15 = vsel %vm705_vm4, %v654_v62, %v704_v12 }
 0x1a3   : > { %v582_v59 = vpop.xlane.xlu0 %581 }
 0x1a4   : > { %v594_v60 = vpop.xlane.xlu1 %593  ;;  %v666_v27 = vrot.slane %v582_v59, %v637_v51 }
 0x1a5   : > { %v682_v16 = vrot.slane %v594_v60, %v637_v51 }
 0x1a7   : > { %v576_v1 = vpop.xlane.xlu0 %575 }
 0x1a8   : > { %v588_v13 = vpop.xlane.xlu1 %587  ;;  %v658_v14 = vrot.slane %v576_v1, %v637_v51  ;;  %v774_v1 = vsub.s32 3, %v1678_v48 }
 0x1a9   : > { %v674_v11 = vrot.slane %v588_v13, %v637_v51  ;;  %v781_v13 = vsub.s32 4, %v1678_v48 }
 0x1aa   : > { %v708_v17 = vsel %vm707_vm5, %v658_v14, %v706_v15 }
 0x1ab   : > { %v713_v19 = vsel %vm699_vm1, %v674_v11, %v670_v0  ;;  %v710_v25 = vsel %vm709_vm6, %v662_v18, %v708_v17  ;;  %v795_v18 = vsub.s32 6, %v1678_v48 }
 0x1ac   : > { %v714_v21 = vsel %vm701_vm2, %v678_v10, %v713_v19  ;;  %v616_v22 = vpop.permute.xlu1 %615  ;;  %v712_v34 = vsel %vm711_vm7, %v666_v27, %v710_v25 }
 0x1ad   : > { %v715_v24 = vsel %vm703_vm3, %v682_v16, %v714_v21  ;;  %vm618_vm8 = vcmp.lt.s32.totalorder %v1676_v47, %v616_v22  ;;  %v788_v16 = vsub.s32 5, %v1678_v48  ;;  %v802_v21 = vsub.s32 7, %v1678_v48 }
 0x1ae   : > { %v716_v28 = vsel %vm705_vm4, %v686_v20, %v715_v24 }
 0x1af   : > { %v613_v30 = vpop.permute.xlu0 %612  ;;  %v717_v31 = vsel %vm707_vm5, %v690_v23, %v716_v28  ;;  %v1363_v28 = vld [vmem:[%s1842_s5] sm:$0xff]  }
 0x1b0   : > { %vm617_vm10 = vcmp.lt.s32.totalorder %v1676_v47, %v613_v30  ;;  %v718_v32 = vsel %vm709_vm6, %v694_v26, %v717_v31  ;;  %v767_v47 = vsub.s32 2, %v1678_v48  ;;  %v1479_v48 = vmov 0.0  }
 0x1b1   : > { %v719_v35 = vsel %vm711_vm7, %v698_v29, %v718_v32  ;;  %v722_v36 = vsel %vm617_vm10, %v712_v34, -1e+30  ;;  %1294 = vmatprep.subr.bf16.mxu1 %v1479_v48  ;;  %1298 = vmatprep.mubr.msk.bf16.mxu1 %vm1480_vm11, %v1479_v48  ;;  %v1364_v29 = vld [vmem:[%s1842_s5 + $0x8] sm:$0xff]   ;;  %v520_v30 = vunpack.c.l.bf16 %v1582_v2  ;;  %v521_v31 = vunpack.c.h.bf16 %v1582_v2 }
 0x1b2   : > { %v723_v37 = vsel %vm618_vm8, %v719_v35, -1e+30  ;;  %v725_v38 = vsel %vm724_vm9, %v722_v36, -inf  ;;  %1295 = vmatpush3.bf16.msra.mxu1 %v1363_v28 }
 0x1b3   : > { %v728_v39 = vsel %vm724_vm9, %v723_v37, -inf  ;;  %726 = vmax.xlane.f32.xlu1 %v725_v38  ;;  %1296 = vmatprep.subr.bf16.mxu1 %v1479_v48  ;;  %v531_v38 = vunpack.c.h.bf16 %v1610_v9 }
 0x1b4   : > { %729 = vmax.xlane.f32.xlu0 %v728_v39 }
 0x1b6   : > { %1297 = vmatpush3.bf16.msra.mxu1 %v1364_v29 }
 0x240   : > { %v727_v33 = vpop.xlane.xlu1 %726 }
 0x241   : > { %v731_v40 = vsub.f32 %v722_v36, %v727_v33  ;;  %v730_v41 = vpop.xlane.xlu0 %729 }
 0x242   : > { %v732_v42 = vsub.f32 %v723_v37, %v730_v41  ;;  %v522_v37 = vunpack.c.l.bf16 %v1586_v4 }
 0x243   : > { %v733_v43 = vmul.f32 1.442695, %v731_v40 }
 0x244   : > { %v735_v44 = vmul.f32 1.442695, %v732_v42 }
 0x245   : > { %1405 = vpow2.f32 %v733_v43 }
 0x246   : > { %1407 = vpow2.f32 %v735_v44 }
 0x24f   : > { %v1406_v45 = vpop.eup %1405 }
 0x250   : > { %v1408_v46 = vpop.eup %1407  ;;  %v737_v49 = vsel %vm617_vm10, %v1406_v45, 0.0 }
 0x251   : > { %v739_v50 = vsel %vm724_vm9, %v737_v49, 0.0  ;;  %v738_v51 = vsel %vm618_vm8, %v1408_v46, 0.0 }
 0x252   : > { %740 = vadd.xlane.f32.xlu1 %v739_v50  ;;  %v742_v52 = vsel %vm724_vm9, %v738_v51, 0.0  ;;  %v532_v50 = vunpack.c.l.bf16 %v1584_v3 }
 0x256   : > { %743 = vadd.xlane.f32.xlu1 %v742_v52 }
 0x2df   : > { %v741_v53 = vpop.xlane.xlu1 %740 }
 0x2e0   : > { %v745_v54 = vmax.f32 %v741_v53, 1e-30 }
 0x2e2   : > { %1409 = vrcp.f32 %v745_v54 }
 0x2e3   : > { %v744_v55 = vpop.xlane.xlu1 %743 }
 0x2e4   : > { %v746_v56 = vmax.f32 %v744_v55, 1e-30 }
 0x2e6   : > { %1411 = vrcp.f32 %v746_v56 }
 0x2ec   : > { %v1410_v59 = vpop.eup %1409 }
 0x2ed   : > { %v749_v60 = vmul.f32 %v1410_v59, %v737_v49  ;;  %v523_v49 = vunpack.c.h.bf16 %v1586_v4 }
 0x2ef   : > { %v761_v61 = vrot.slane %v749_v60, %v760_v57  ;;  %v754_v62 = vrot.slane %v749_v60, %v753_v58  ;;  %v768_v10 = vrot.slane %v749_v60, %v767_v47  ;;  %v775_v14 = vrot.slane %v749_v60, %v774_v1 }
 0x2f0   : > { %v1412_v63 = vpop.eup %1411  ;;  %v782_v11 = vrot.slane %v749_v60, %v781_v13  ;;  %v789_v19 = vrot.slane %v749_v60, %v788_v16  ;;  %v796_v26 = vrot.slane %v749_v60, %v795_v18  ;;  %v803_v27 = vrot.slane %v749_v60, %v802_v21 }
 0x2f1   : > { %v750_v0 = vmul.f32 %v1412_v63, %v738_v51  ;;  %763 = vbcast.lane.b32.xlu0 %v761_v61, 256  ;;  %756 = vbcast.lane.b32.xlu1 %v754_v62, 256  ;;  %v524_v61 = vunpack.c.l.bf16 %v1590_v6  ;;  %v533_v62 = vunpack.c.h.bf16 %v1584_v3 }
 0x2f3   : > { %v831_v12 = vrot.slane %v750_v0, %v774_v1  ;;  %v838_v15 = vrot.slane %v750_v0, %v781_v13  ;;  %v845_v17 = vrot.slane %v750_v0, %v788_v16  ;;  %v852_v20 = vrot.slane %v750_v0, %v795_v18 }
 0x2f4   : > { %v859_v22 = vrot.slane %v750_v0, %v802_v21  ;;  %v810_v23 = vrot.slane %v750_v0, %v753_v58  ;;  %v817_v24 = vrot.slane %v750_v0, %v760_v57  ;;  %v824_v25 = vrot.slane %v750_v0, %v767_v47 }
 0x2f5   : > { %770 = vbcast.lane.b32.xlu1 %v768_v10, 256  ;;  %833 = vbcast.lane.b32.xlu0 %v831_v12, 256 }
 0x2f9   : > { %777 = vbcast.lane.b32.xlu1 %v775_v14, 256  ;;  %840 = vbcast.lane.b32.xlu0 %v838_v15, 256 }
 0x2fd   : > { %784 = vbcast.lane.b32.xlu1 %v782_v11, 256  ;;  %847 = vbcast.lane.b32.xlu0 %v845_v17, 256 }
 0x301   : > { %791 = vbcast.lane.b32.xlu1 %v789_v19, 256  ;;  %854 = vbcast.lane.b32.xlu0 %v852_v20, 256  ;;  %v525_v19 = vunpack.c.h.bf16 %v1590_v6  ;;  %v535_v6 = vunpack.c.h.bf16 %v1588_v5 }
 0x305   : > { %861 = vbcast.lane.b32.xlu0 %v859_v22, 256  ;;  %812 = vbcast.lane.b32.xlu1 %v810_v23, 256 }
 0x309   : > { %1127 = vrot.lane.b32.xlu0 %v750_v0, %s1478_s17  ;;  %819 = vbcast.lane.b32.xlu1 %v817_v24, 256 }
 0x30d   : > { %826 = vbcast.lane.b32.xlu1 %v824_v25, 256  ;;  %v534_v25 = vunpack.c.l.bf16 %v1588_v5 }
 0x311   : > { %798 = vbcast.lane.b32.xlu1 %v796_v26, 256 }
 0x315   : > { %805 = vbcast.lane.b32.xlu1 %v803_v27, 256 }
 0x319   : > { %1125 = vrot.lane.b32.xlu1 %v749_v60, %s1478_s17  ;;  %s1792_s17 = scalar_lea.hbm %s1844_s7, %s1260_s9 }
 0x363   : > { %v757_v32 = vpop.permute.xlu1 %756  ;;  %v764_v34 = vpop.permute.xlu0 %763 }
 0x364   : > { %v863_v35 = vmul.f32 %v757_v32, %v520_v30  ;;  %v864_v36 = vmul.f32 %v764_v34, %v521_v31  ;;  %v528_v30 = vunpack.c.l.bf16 %v1604_v8 }
 0x366   : > { %v879_v39 = vsel %vm382_vm0, %v863_v35, 0.0  ;;  %v886_v33 = vsel %vm382_vm0, %v864_v36, 0.0 }
 0x367   : > { %v880_v40 = vrot.slane %v879_v39, 4  ;;  %v887_v41 = vrot.slane %v886_v33, 4  ;;  %v771_v42 = vpop.permute.xlu1 %770  ;;  %v834_v43 = vpop.permute.xlu0 %833 }
 0x368   : > { %v865_v44 = vmul.f32 %v771_v42, %v522_v37  ;;  %v874_v45 = vmul.f32 %v834_v43, %v531_v38 }
 0x369   : > { %v881_v46 = vadd.f32 %v880_v40, %v879_v39  ;;  %v888_v2 = vadd.f32 %v887_v41, %v886_v33  ;;  %v529_v39 = vunpack.c.h.bf16 %v1604_v8  ;;  %v530_v33 = vunpack.c.l.bf16 %v1610_v9 }
 0x36a   : > { %v893_v51 = vsel %vm382_vm0, %v865_v44, 0.0  ;;  %v956_v52 = vsel %vm382_vm0, %v874_v45, 0.0  ;;  %v526_v44 = vunpack.c.l.bf16 %v1602_v7 }
 0x36b   : > { %v882_v53 = vrot.slane %v881_v46, 2  ;;  %v889_v54 = vrot.slane %v888_v2, 2  ;;  %v894_v55 = vrot.slane %v893_v51, 4  ;;  %v957_v56 = vrot.slane %v956_v52, 4  ;;  %v778_v57 = vpop.permute.xlu1 %777  ;;  %v841_v58 = vpop.permute.xlu0 %840 }
 0x36c   : > { %v866_v59 = vmul.f32 %v778_v57, %v523_v49  ;;  %v875_v60 = vmul.f32 %v841_v58, %v532_v50 }
 0x36d   : > { %v883_v47 = vadd.f32 %v882_v53, %v881_v46  ;;  %v890_v4 = vadd.f32 %v889_v54, %v888_v2  ;;  %v895_v63 = vadd.f32 %v894_v55, %v893_v51  ;;  %v958_v0 = vadd.f32 %v957_v56, %v956_v52 }
 0x36e   : > { %v900_v12 = vsel %vm382_vm0, %v866_v59, 0.0  ;;  %v963_v13 = vsel %vm382_vm0, %v875_v60, 0.0  ;;  %v527_v59 = vunpack.c.h.bf16 %v1602_v7 }
 0x36f   : > { %v785_v1 = vpop.permute.xlu1 %784  ;;  %v848_v10 = vpop.permute.xlu0 %847  ;;  %v884_v16 = vrot.slane %v883_v47, 1  ;;  %v891_v11 = vrot.slane %v890_v4, 1  ;;  %v896_v17 = vrot.slane %v895_v63, 2  ;;  %v959_v18 = vrot.slane %v958_v0, 2 }
 0x370   : > { %v867_v14 = vmul.f32 %v785_v1, %v524_v61  ;;  %v876_v15 = vmul.f32 %v848_v10, %v533_v62  ;;  %v901_v3 = vrot.slane %v900_v12, 4  ;;  %v964_v21 = vrot.slane %v963_v13, 4 }
 0x371   : > { %v885_v26 = vadd.f32 %v884_v16, %v883_v47  ;;  %v892_v27 = vadd.f32 %v891_v11, %v890_v4  ;;  %v897_v28 = vadd.f32 %v896_v17, %v895_v63  ;;  %v960_v48 = vadd.f32 %v959_v18, %v958_v0 }
 0x372   : > { %v907_v23 = vsel %vm382_vm0, %v867_v14, 0.0  ;;  %v970_v24 = vsel %vm382_vm0, %v876_v15, 0.0  ;;  %v902_v32 = vadd.f32 %v901_v3, %v900_v12  ;;  %v965_v34 = vadd.f32 %v964_v21, %v963_v13 }
 0x373   : > { %v792_v20 = vpop.permute.xlu1 %791  ;;  %v855_v22 = vpop.permute.xlu0 %854  ;;  %v908_v35 = vrot.slane %v907_v23, 4  ;;  %v971_v36 = vrot.slane %v970_v24, 4  ;;  %v991_v40 = vpack.c.bf16 %v885_v26, %v885_v26  ;;  %v992_v41 = vpack.c.bf16 %v892_v27, %v892_v27 }
 0x374   : > { %v868_v29 = vmul.f32 %v792_v20, %v525_v19  ;;  %v877_v38 = vmul.f32 %v855_v22, %v534_v25  ;;  %v898_v42 = vrot.slane %v897_v28, 1  ;;  %v961_v45 = vrot.slane %v960_v48, 1 }
 0x375   : > { %v903_v50 = vrot.slane %v902_v32, 2  ;;  %v966_v51 = vrot.slane %v965_v34, 2  ;;  %v909_v52 = vadd.f32 %v908_v35, %v907_v23  ;;  %v972_v53 = vadd.f32 %v971_v36, %v970_v24 }
 0x376   : > { %v914_v37 = vsel %vm382_vm0, %v868_v29, 0.0  ;;  %v977_v5 = vsel %vm382_vm0, %v877_v38, 0.0  ;;  %v1034_v56 = vunpack.c.l.b16 %v991_v40  ;;  %v1035_v57 = vunpack.c.l.b16 %v992_v41 }
 0x377   : > { %v813_v31 = vpop.permute.xlu1 %812  ;;  %v862_v43 = vpop.permute.xlu0 %861  ;;  %v915_v46 = vrot.slane %v914_v37, 4  ;;  %v978_v8 = vrot.slane %v977_v5, 4  ;;  %v899_v58 = vadd.f32 %v898_v42, %v897_v28  ;;  %v1751_v60 = vadd.f32 %v961_v45, %v960_v48 }
 0x378   : > { %v871_v2 = vmul.f32 %v813_v31, %v528_v30  ;;  %v878_v55 = vmul.f32 %v862_v43, %v535_v6  ;;  %v904_v63 = vadd.f32 %v903_v50, %v902_v32  ;;  %v910_v0 = vrot.slane %v909_v52, 2 }
 0x379   : > { %v916_v54 = vadd.f32 %v915_v46, %v914_v37  ;;  %v979_v61 = vadd.f32 %v978_v8, %v977_v5  ;;  %v973_v1 = vrot.slane %v972_v53, 2  ;;  %v967_v12 = vadd.f32 %v966_v51, %v965_v34 }
 0x37a   : > { %v935_v9 = vsel %vm382_vm0, %v871_v2, 0.0  ;;  %v984_v47 = vsel %vm382_vm0, %v878_v55, 0.0  ;;  %v1755_v16 = vsel %vm699_vm1, %v1035_v57, %v1034_v56  ;;  %v993_v11 = vpack.c.bf16 %v899_v58, %v899_v58 }
 0x37b   : > { %v820_v49 = vpop.permute.xlu1 %819  ;;  %v936_v62 = vrot.slane %v935_v9, 4  ;;  %v985_v10 = vrot.slane %v984_v47, 4  ;;  %v917_v13 = vrot.slane %v916_v54, 2  ;;  %v1002_v18 = vpack.c.bf16 %v1751_v60, %v1751_v60 }
 0x37c   : > { %v872_v15 = vmul.f32 %v820_v49, %v529_v39  ;;  %v980_v19 = vrot.slane %v979_v61, 2  ;;  %v911_v22 = vadd.f32 %v910_v0, %v909_v52  ;;  %v974_v23 = vadd.f32 %v973_v1, %v972_v53 }
 0x37d   : > { %v937_v14 = vadd.f32 %v936_v62, %v935_v9  ;;  %v986_v7 = vadd.f32 %v985_v10, %v984_v47  ;;  %v918_v26 = vadd.f32 %v917_v13, %v916_v54  ;;  %v905_v29 = vrot.slane %v904_v63, 1 }
 0x37e   : > { %v942_v3 = vsel %vm382_vm0, %v872_v15, 0.0  ;;  %v968_v30 = vrot.slane %v967_v12, 1  ;;  %v1761_v32 = vunpack.c.l.b16 %v993_v11  ;;  %v981_v34 = vadd.f32 %v980_v19, %v979_v61 }
 0x37f   : > { %v827_v4 = vpop.permute.xlu1 %826  ;;  %v938_v20 = vrot.slane %v937_v14, 2  ;;  %v943_v24 = vrot.slane %v942_v3, 4  ;;  %v987_v28 = vrot.slane %v986_v7, 2  ;;  %v912_v38 = vrot.slane %v911_v22, 1 }
 0x380   : > { %v873_v17 = vmul.f32 %v827_v4, %v530_v33  ;;  %v975_v41 = vrot.slane %v974_v23, 1  ;;  %v919_v42 = vrot.slane %v918_v26, 1  ;;  %v906_v49 = vadd.f32 %v905_v29, %v904_v63 }
 0x381   : > { %v939_v27 = vadd.f32 %v938_v20, %v937_v14  ;;  %v944_v31 = vadd.f32 %v943_v24, %v942_v3  ;;  %v988_v43 = vadd.f32 %v987_v28, %v986_v7  ;;  %v969_v50 = vadd.f32 %v968_v30, %v967_v12 }
 0x382   : > { %v949_v25 = vsel %vm382_vm0, %v873_v17, 0.0  ;;  %v982_v51 = vrot.slane %v981_v34, 1  ;;  %v913_v53 = vadd.f32 %v912_v38, %v911_v22  ;;  %v976_v55 = vadd.f32 %v975_v41, %v974_v23 }
 0x383   : > { %v799_v21 = vpop.permute.xlu1 %798  ;;  %v950_v48 = vrot.slane %v949_v25, 4  ;;  %v940_v35 = vrot.slane %v939_v27, 1  ;;  %v945_v39 = vrot.slane %v944_v31, 2  ;;  %v920_v56 = vadd.f32 %v919_v42, %v918_v26 }
 0x384   : > { %v869_v6 = vmul.f32 %v799_v21, %v526_v44  ;;  %v989_v57 = vrot.slane %v988_v43, 1  ;;  %v994_v4 = vpack.c.bf16 %v906_v49, %v906_v49  ;;  %v1003_v0 = vpack.c.bf16 %v969_v50, %v969_v50  ;;  %v1251_v49 = vld [vmem:[%s1843_s6] ss:$0 sm:$0xff] }
 0x385   : > { %v951_v36 = vadd.f32 %v950_v48, %v949_v25  ;;  %v941_v46 = vadd.f32 %v940_v35, %v939_v27  ;;  %v946_v5 = vadd.f32 %v945_v39, %v944_v31  ;;  %v983_v1 = vadd.f32 %v982_v51, %v981_v34 }
 0x386   : > { %v921_v33 = vsel %vm382_vm0, %v869_v6, 0.0  ;;  %v995_v63 = vpack.c.bf16 %v913_v53, %v913_v53  ;;  %v1004_v15 = vpack.c.bf16 %v976_v55, %v976_v55  ;;  %v996_v11 = vpack.c.bf16 %v920_v56, %v920_v56  ;;  %v1128_v55 = vpop.permute.xlu0 %1127 }
 0x387   : > { %v806_v37 = vpop.permute.xlu1 %805  ;;  %v952_v45 = vrot.slane %v951_v36, 2  ;;  %v922_v2 = vrot.slane %v921_v33, 4  ;;  %v947_v54 = vrot.slane %v946_v5, 1  ;;  %v990_v7 = vadd.f32 %v989_v57, %v988_v43 }
 0x388   : > { %v870_v40 = vmul.f32 %v806_v37, %v527_v59  ;;  %v999_v59 = vpack.c.bf16 %v941_v46, %v941_v46  ;;  %v1045_v22 = vunpack.c.l.b16 %v1002_v18  ;;  %v1037_v23 = vunpack.c.l.b16 %v994_v4 }
 0x389   : > { %v953_v52 = vadd.f32 %v952_v45, %v951_v36  ;;  %v923_v8 = vadd.f32 %v922_v2, %v921_v33  ;;  %v948_v61 = vadd.f32 %v947_v54, %v946_v5  ;;  %v1005_v24 = vpack.c.bf16 %v983_v1, %v983_v1 }
 0x38a   : > { %v928_v44 = vsel %vm382_vm0, %v870_v40, 0.0  ;;  %v1042_v19 = vunpack.c.l.b16 %v999_v59  ;;  %v1046_v26 = vunpack.c.l.b16 %v1003_v0  ;;  %v1038_v29 = vunpack.c.l.b16 %v995_v63 }
 0x38b   : > { %v929_v9 = vrot.slane %v928_v44, 4  ;;  %v954_v58 = vrot.slane %v953_v52, 1  ;;  %v924_v62 = vrot.slane %v923_v8, 2  ;;  %v1000_v12 = vpack.c.bf16 %v948_v61, %v948_v61  ;;  %v1126_v54 = vpop.permute.xlu1 %1125 }
 0x38c   : > { %v1047_v30 = vunpack.c.l.b16 %v1004_v15  ;;  %v1039_v31 = vunpack.c.l.b16 %v996_v11  ;;  %v1006_v34 = vpack.c.bf16 %v990_v7, %v990_v7  ;;  %v1051_v60 = vsel %vm701_vm2, %v1761_v32, %v1755_v16 }
 0x38d   : > { %v930_v47 = vadd.f32 %v929_v9, %v928_v44  ;;  %v955_v10 = vadd.f32 %v954_v58, %v953_v52  ;;  %v925_v13 = vadd.f32 %v924_v62, %v923_v8  ;;  %v1043_v20 = vunpack.c.l.b16 %v1000_v12 }
 0x38e   : > { %v1048_v18 = vunpack.c.l.b16 %v1005_v24  ;;  %v1052_v39 = vsel %vm703_vm3, %v1037_v23, %v1051_v60  ;;  %v1049_v46 = vunpack.c.l.b16 %v1006_v34 }
 0x38f   : > { %v931_v14 = vrot.slane %v930_v47, 2  ;;  %v1001_v17 = vpack.c.bf16 %v955_v10, %v955_v10  ;;  %v926_v3 = vrot.slane %v925_v13, 1  ;;  %v1057_v27 = vsel %vm699_vm1, %v1043_v20, %v1042_v19 }
 0x390   : > { %v1053_v42 = vsel %vm705_vm4, %v1038_v29, %v1052_v39 }
 0x391   : > { %v932_v21 = vadd.f32 %v931_v14, %v930_v47  ;;  %v1044_v25 = vunpack.c.l.b16 %v1001_v17  ;;  %v927_v28 = vadd.f32 %v926_v3, %v925_v13  ;;  %v1054_v45 = vsel %vm707_vm5, %v1039_v31, %v1053_v42 }
 0x393   : > { %v933_v48 = vrot.slane %v932_v21, 1  ;;  %v1058_v6 = vsel %vm701_vm2, %v1044_v25, %v1057_v27  ;;  %v997_v36 = vpack.c.bf16 %v927_v28, %v927_v28 }
 0x394   : > { %v1059_v35 = vsel %vm703_vm3, %v1045_v22, %v1058_v6 }
 0x395   : > { %v934_v37 = vadd.f32 %v933_v48, %v932_v21  ;;  %v1060_v38 = vsel %vm705_vm4, %v1046_v26, %v1059_v35  ;;  %v1040_v33 = vunpack.c.l.b16 %v997_v36 }
 0x396   : > { %v1061_v41 = vsel %vm707_vm5, %v1047_v30, %v1060_v38 }
 0x397   : > { %v998_v40 = vpack.c.bf16 %v934_v37, %v934_v37  ;;  %v1062_v43 = vsel %vm709_vm6, %v1048_v18, %v1061_v41  ;;  %v1055_v16 = vsel %vm709_vm6, %v1040_v33, %v1054_v45 }
 0x398   : > { %v1063_v2 = vsel %vm711_vm7, %v1049_v46, %v1062_v43 }
 0x399   : > { %v1041_v5 = vunpack.c.l.b16 %v998_v40 }
 0x39b   : > { %v1056_v32 = vsel %vm711_vm7, %v1041_v5, %v1055_v16 }
 0x39c   : > { %v1064_v44 = vpack.c.b16 %v1063_v2, %v1056_v32 }
 0x39e   : > { %1299 = vmatmul.mubr.msk.bf16.vlgmr.msra.gmra.mrb[4].mxu1 %vm382_vm0, %v1064_v44 }
 0x471   : > { %v1114_v50 = vpop.f32.mrb[4].mxu1 }
 0x472   : > { %v1115_v51 = vadd.f32 %v1251_v49, %v1114_v50  ;;  %v1300_v52 = vpop.f32.mrb[5].mxu1 }
 0x473   : > { %v1117_v53 = vpop.f32.mrb[6].mxu1 }
 0x474   : > { %1121 = vst [vmem:[%s288_s13] sm:$0xff] %v1115_v51  ;;  %v1118_v8 = vadd.f32 %v1251_v49, %v1117_v53  ;;  %v1301_v9 = vpop.f32.mrb[7].mxu1 }
 0x475   : > { %1132 = vst.msk [vmem:[%s288_s13] sm:$0xff] %vm1131_vm12, %v1126_v54 }
 0x476   : > { %1122 = vst [vmem:[%s288_s13 + $0x8] sm:$0xff] %v1118_v8 }
 0x477   : > { %1133 = vst.msk [vmem:[%s288_s13 + $0x8] sm:$0xff] %vm1131_vm12, %v1128_v55 }
 0x478   : > { %1426 = shalt.err (!%p1423_p4)
}
 0x479   : > { %s1427_s22 = scalar_lea.hbm %s1792_s17, 256  ;;  %s1431_s8 = scalar_lea.hbm %s1844_s7, 512 }
 0x47a   : > { %p1428_p7 = scmp.ne.s32.totalorder %s1792_s17, %s1427_s22  ;;  %p1432_p10 = scmp.lt.u32.totalorder %s1792_s17, %s1844_s7 }
 0x47b   : > { %p1433_p11 = scmp.lt.u32.totalorder %s1431_s8, %s1427_s22  ;;  %p1435_p13 = scmp.lt.u32.totalorder %s1427_s22, %s1792_s17 }
 0x47c   : > { %p1429_p8 = pnand %p1428_p7, %p1562_p5 }
 0x47d   : > { %p1434_p12 = por %p1433_p11, %p1432_p10 }
 0x47e   : > { %p1430_p9 = pneg %p1429_p8 }
 0x47f   : > { %p1436_p0 = por %p1435_p13, %p1434_p12 }
 0x481   : > { %p1437_p1 = pnand %p1436_p0, %p1430_p9 }
 0x483   : > { %1440 = shalt.err (!%p1437_p1)
}
 0x484   : > { %s1482_s15 = smov 128   ;;  %s1483_s16 = smov 8  }
 0x485   : > { %1306 = dma.vmem_to_hbm [thread:$0]  (%p1562_p5), %s1794_s14, 256, %s1792_s17, %s1796_s28, %s1482_s15, %s1482_s15, %s1483_s16  }
 0x486 PF: > { %p1312_p2 = scmp.ge.s32.totalorder %s1475_s27, 2  ;;  %s1163_s18 = sand.u32 1, %s1463_s24  }
 0x487   : > { %s1164_s19 = scalar_lea.sflag [#allocation3], %s1163_s18 }
 0x488   : > { %p1309_p3 = pnand %p1312_p2, %p1566_p6 }
 0x48a   : > { %1458 = dma.done.wait (!%p1309_p3), %s1164_s19, 256  }
 0x48b   : > { %1460 = vsyncadd (!%p1309_p3), %s1164_s19, 4294967040  ;;  %p17_p4 = scmp.ge.s32.totalorder %s1549_s30, 4   ;;  %s1847_s24 = smov %s1467_s25 }
 0x48c   : > { %s1848_s25 = smov %s1471_s26  ;;  %s1849_s26 = smov %s1560_s10 }
 0x48d   : > { %s1850_s27 = smov %s1549_s30  ;;  %19 = sbr.rel (!%p17_p4) target bundleno = 3 (0x3), region = 86 }
 0x494   :  { %1169 = vsyncpa [#allocation3], 1 }
 0x495   :  { %1171 = vsyncpa [#allocation3 + $0x1], 1 }

</bundles_post_ra>
